<compile_context>
chip_gen: v7x
topology: tpu7x:2x2x1
jax: 0.10.0
libtpu: 0.0.40
codegen_flags: <defaults>
</compile_context>

<pallas_src>
import functools

import jax
import jax.numpy as jnp
from jax.experimental import pallas as pl
from jax.experimental.pallas import tpu as pltpu


# --------------------------------------------------------------------------- #
# Kernel
# --------------------------------------------------------------------------- #
def _cpo_logp_kernel(x_ref, w_ref, b_ref, t_ref, out_ref,
                     m_scr, l_scr, g_scr, *, v_tile):
    # x_ref : (m_tile, H)  bf16   token-tile activations (resident per vocab sweep)
    # w_ref : (v_tile, H)  bf16   vocab-tile of the LM-head weight (streamed)
    # b_ref : (v_tile, 1)  f32    vocab-tile of the bias (padded rows = -1e30)
    # t_ref : (1, m_tile)  int32  targets (lane-dense)
    # out_ref: (1, m_tile) f32    per-token log p(target) (lane-dense)
    # m_scr / l_scr / g_scr : (1, m_tile) f32 online-softmax accumulators
    j = pl.program_id(1)
    nv = pl.num_programs(1)

    @pl.when(j == 0)
    def _():
        m_scr[...] = jnp.full_like(m_scr, -jnp.inf)
        l_scr[...] = jnp.zeros_like(l_scr)
        g_scr[...] = jnp.zeros_like(g_scr)

    # logits_T = W_tile @ x_tile^T -> (v_tile, m_tile), f32 accumulate on MXU.
    logits = jax.lax.dot_general(
        w_ref[...], x_ref[...], (((1,), (1,)), ((), ())),
        preferred_element_type=jnp.float32,
    ) + b_ref[...]                                        # bias broadcast (v_tile, 1)

    # Online logsumexp over the vocab (sublane) axis.
    m_prev = m_scr[...]                                   # (1, m_tile)
    m_new = jnp.maximum(m_prev, jnp.max(logits, axis=0, keepdims=True))
    corr = jnp.exp(m_prev - m_new)
    l_scr[...] = corr * l_scr[...] + jnp.sum(
        jnp.exp(logits - m_new), axis=0, keepdims=True)
    m_scr[...] = m_new

    # Target gather: shift the (1, m_tile) targets into this tile's *local*
    # vocab coordinates (one cheap lane-row op) instead of adding j*v_tile to
    # the full (v_tile, m_tile) iota each grid step.  ignore_index rows either
    # never hit (negative index) or hit an arbitrary logit that the scalar
    # tail masks out anyway, so no extra select is needed.
    loc_tgt = t_ref[...] - j * v_tile                     # (1, m_tile) int32
    local_ids = jax.lax.broadcasted_iota(jnp.int32, logits.shape, 0)
    g_scr[...] += jnp.sum(
        jnp.where(local_ids == loc_tgt, logits, 0.0), axis=0, keepdims=True)

    @pl.when(j == nv - 1)
    def _():
        # log p(target) = gathered_logit - logsumexp(logits)
        out_ref[...] = g_scr[...] - (m_scr[...] + jnp.log(l_scr[...]))


# --------------------------------------------------------------------------- #
# Per-generation tiling / VMEM configuration
# --------------------------------------------------------------------------- #
def _default_config():
    """(m_tile, v_tile, vmem_limit_bytes) picked per TPU generation."""
    kind = ""
    try:
        kind = jax.devices()[0].device_kind.lower()
    except Exception:
        pass
    mib = 1024 * 1024
    if "v5" in kind:
        # ~197 TF/s / 0.82 TB/s knee (~240 FLOP/B): m_tile=512 gives 2x margin.
        # Scoped VMEM default is only 16 MiB -> must raise it (physical 128 MiB).
        return 512, 256, 96 * mib
    if "v6" in kind:
        # ~918 TF/s / 1.4 TB/s knee (~650 FLOP/B): big token tiles needed.
        return 1024, 256, 96 * mib
    if "v7" in kind:
        # 64 MiB physical VMEM per TC (HBM shared by 2 TCs): stay well under.
        return 512, 256, 48 * mib
    return 512, 256, 64 * mib


def _fit_tiles(m_tile, v_tile, H, budget_bytes):
    """Shrink tiles until the VMEM estimate fits (W double-buffered, x/targets
    single-buffered, f32 logits + exp/select temporaries)."""
    def est(mt, vt):
        w_b = 2 * vt * H * 2        # W tile, double-buffered, bf16
        x_b = 1 * mt * H * 2        # x tile, single-buffered, bf16
        tmp_b = 3 * vt * mt * 4     # f32 logits + exp/where temporaries
        acc_b = 8 * mt * 4          # (1, m_tile) scratch / out / targets
        return w_b + x_b + tmp_b + acc_b

    while est(m_tile, v_tile) > budget_bytes:
        if v_tile > 256:
            v_tile //= 2
        elif m_tile > 256:
            m_tile //= 2
        elif v_tile > 128:
            v_tile //= 2
        elif m_tile > 128:
            m_tile //= 2
        else:
            break
    return m_tile, v_tile


def _build_pallas_call(kernel, n_pad, v_pad, H, m_tile, v_tile,
                       vmem_limit_bytes, use_buffered):
    def spec(shape, index_map, buffers=None):
        if use_buffered and buffers is not None and hasattr(pl, "Buffered"):
            try:
                return pl.BlockSpec(shape, index_map,
                                    pipeline_mode=pl.Buffered(buffers))
            except TypeError:
                pass
        return pl.BlockSpec(shape, index_map)

    grid = (n_pad // m_tile, v_pad // v_tile)
    return pl.pallas_call(
        kernel,
        out_shape=jax.ShapeDtypeStruct((1, n_pad), jnp.float32),
        grid_spec=pltpu.PrefetchScalarGridSpec(
            num_scalar_prefetch=0,
            grid=grid,
            in_specs=[
                # x: block index only changes once per vocab sweep -> 1 buffer.
                spec((m_tile, H), lambda i, j: (i, 0), buffers=1),
                # W: streamed over the vocab axis, default double-buffering.
                spec((v_tile, H), lambda i, j: (j, 0)),
                # bias tile.
                spec((v_tile, 1), lambda i, j: (j, 0)),
                # targets (lane-dense), resident per vocab sweep -> 1 buffer.
                spec((1, m_tile), lambda i, j: (0, i), buffers=1),
            ],
            out_specs=pl.BlockSpec((1, m_tile), lambda i, j: (0, i)),
            scratch_shapes=[pltpu.VMEM((1, m_tile), jnp.float32),   # running max
                            pltpu.VMEM((1, m_tile), jnp.float32),   # running sum
                            pltpu.VMEM((1, m_tile), jnp.float32)],  # target logit
        ),
        compiler_params=pltpu.CompilerParams(
            dimension_semantics=("parallel", "arbitrary"),
            vmem_limit_bytes=vmem_limit_bytes),
    )


# --------------------------------------------------------------------------- #
# Forward wrapper
# --------------------------------------------------------------------------- #
def fused_linear_cpo_loss(lin_weight, _input, target, bias=None, *,
                          ignore_index=-100, beta=0.1, alpha=1.0,
                          compute_nll_loss=True, m_tile=None, v_tile=None,
                          vmem_limit_bytes=None):
    """Forward of LigerFusedLinearCPOLoss. Returns a scalar f32 loss."""
    twoB, T, H = _input.shape
    V = lin_weight.shape[0]
    assert twoB % 2 == 0, "batch must stack chosen and rejected halves"
    B = twoB // 2
    N = twoB * T

    dm, dv, dvmem = _default_config()
    if m_tile is None:
        m_tile = dm
    if v_tile is None:
        v_tile = dv
    if vmem_limit_bytes is None:
        vmem_limit_bytes = dvmem

    # Clamp tiles to the problem size (lane/MXU alignment: multiples of 128).
    n_al = pl.cdiv(N, 128) * 128
    v_al = pl.cdiv(V, 128) * 128
    m_tile = min(m_tile, n_al)
    v_tile = min(v_tile, v_al)
    # Keep >= 2 token tiles so the "parallel" axis splits across TensorCores
    # (v7x megacore); harmless on 1-TC chips.
    if n_al >= 256:
        m_tile = min(m_tile, max(128, (n_al // 2) // 128 * 128))
    # Fit the explicit VMEM budget (leave headroom for compiler temporaries).
    m_tile, v_tile = _fit_tiles(m_tile, v_tile, H, int(0.75 * vmem_limit_bytes))

    n_pad = pl.cdiv(N, m_tile) * m_tile
    v_pad = pl.cdiv(V, v_tile) * v_tile

    # Activations: bf16 for the MXU; softmax math stays f32 inside the kernel.
    x = _input.reshape(N, H)
    if x.dtype != jnp.bfloat16:
        x = x.astype(jnp.bfloat16)
    if n_pad != N:
        x = jnp.pad(x, ((0, n_pad - N), (0, 0)))

    # LM-head weight: avoid a per-call HBM copy of the full head whenever the
    # caller already supplies bf16 and V is a multiple of v_tile.
    # TODO(synk): for production training, pre-cast / pre-pad the weight once
    # outside the step function instead of relying on this fast path.
    w = lin_weight if lin_weight.dtype == jnp.bfloat16 else lin_weight.astype(jnp.bfloat16)
    if v_pad != V:
        w = jnp.pad(w, ((0, v_pad - V), (0, 0)))

    # Bias stays f32 (padded vocab rows get -1e30 so exp underflows to 0;
    # this relies on the f32 logit path — do not lower the bias to bf16).
    b = jnp.zeros((V,), jnp.float32) if bias is None else bias.astype(jnp.float32)
    if v_pad != V:
        b = jnp.pad(b, (0, v_pad - V), constant_values=-1e30)
    b2d = b.reshape(v_pad, 1)

    tgt = target.reshape(N).astype(jnp.int32)
    if n_pad != N:
        tgt = jnp.pad(tgt, (0, n_pad - N), constant_values=ignore_index)
    tgt2d = tgt.reshape(1, n_pad)                         # lane-dense targets

    kernel = functools.partial(_cpo_logp_kernel, v_tile=v_tile)

    def _run(use_buffered):
        call = _build_pallas_call(kernel, n_pad, v_pad, H, m_tile, v_tile,
                                  vmem_limit_bytes, use_buffered)
        return call(x, w, b2d, tgt2d)

    try:
        per_tok_logp = _run(True)
    except Exception:
        # Fallback if this Pallas version rejects pipeline_mode=pl.Buffered(1).
        per_tok_logp = _run(False)

    # -------- cheap scalar tail in JAX glue (O(B*T) elementwise + O(B)) -----
    per_tok_logp = per_tok_logp.reshape(n_pad)[:N].reshape(twoB, T)
    mask = (target != ignore_index).astype(jnp.float32)
    sum_logp = jnp.sum(per_tok_logp * mask, axis=-1)      # (2B,)
    cnt = jnp.sum(mask, axis=-1)                          # (2B,)
    avg_logp = sum_logp / jnp.maximum(cnt, 1.0)           # guard empty seqs

    chosen_logps, rejected_logps = avg_logp[:B], avg_logp[B:]

    # CPO preference loss: mean over pairs of logsigmoid(beta * (c - r)).
    alignment_loss = jnp.mean(jax.nn.log_sigmoid(
        beta * (chosen_logps - rejected_logps)))

    if compute_nll_loss:
        chosen_nll_loss = (-jnp.sum(sum_logp[:B])
                           / jnp.maximum(jnp.sum(cnt[:B]), 1.0))
    else:
        chosen_nll_loss = jnp.float32(0.0)

    return alpha * chosen_nll_loss - alignment_loss


# --------------------------------------------------------------------------- #
# Pure-JAX reference (same bf16-matmul / f32-accumulate precision as kernel)
# --------------------------------------------------------------------------- #
def _cpo_reference(lin_weight, _input, target, bias, *, ignore_index, beta,
                   alpha, compute_nll_loss):
    logits = jnp.einsum(
        "bth,vh->btv",
        _input.astype(jnp.bfloat16), lin_weight.astype(jnp.bfloat16),
        preferred_element_type=jnp.float32) + bias.astype(jnp.float32)
    logp = jax.nn.log_softmax(logits, axis=-1)
    mask = target != ignore_index
    safe = jnp.where(mask, target, 0)
    per_tok = jnp.take_along_axis(logp, safe[..., None], axis=-1)[..., 0]
    B = _input.shape[0] // 2
    sum_logp = jnp.sum(per_tok * mask, axis=-1)
    cnt = jnp.sum(mask, axis=-1).astype(jnp.float32)
    avg = sum_logp / jnp.maximum(cnt, 1.0)
    align = jnp.mean(jax.nn.log_sigmoid(beta * (avg[:B] - avg[B:])))
    if compute_nll_loss:
        nll = -jnp.sum(sum_logp[:B]) / jnp.maximum(jnp.sum(cnt[:B]), 1.0)
    else:
        nll = 0.0
    return alpha * nll - align


if __name__ == "__main__":
    # Small deterministic shapes: B=2 pairs (-> 4 sequences), T=64, H=32, V=256.
    B, T, H, V = 2, 64, 32, 256
    ignore_index, beta, alpha = -100, 0.1, 1.0

    key = jax.random.PRNGKey(0)
    k_x, k_w, k_b, k_t = jax.random.split(key, 4)

    _input = jax.random.normal(k_x, (2 * B, T, H), dtype=jnp.float32) * 0.5
    # Weight supplied in bf16 so the wrapper's no-copy fast path is exercised.
    lin_weight = (jax.random.normal(k_w, (V, H), dtype=jnp.float32) * 0.05
                  ).astype(jnp.bfloat16)
    bias = jax.random.normal(k_b, (V,), dtype=jnp.float32) * 0.01
    target = jax.random.randint(k_t, (2 * B, T), 0, V, dtype=jnp.int32)
    # Exercise ignore_index masking on the last two tokens of every sequence.
    target = target.at[:, -2:].set(ignore_index)

    ref = _cpo_reference(
        lin_weight, _input, target, bias,
        ignore_index=ignore_index, beta=beta, alpha=alpha,
        compute_nll_loss=True,
    )

    # 1) Explicit small tiles: exercises a (2 token-tiles, 2 vocab-tiles) grid,
    #    i.e. both the parallel token axis and the online-logsumexp sweep.
    loss_small = fused_linear_cpo_loss(
        lin_weight, _input, target, bias,
        ignore_index=ignore_index, beta=beta, alpha=alpha,
        compute_nll_loss=True, m_tile=128, v_tile=128,
    )
    loss_small = jax.block_until_ready(loss_small)

    # 2) Auto-configured tiles (per-generation defaults, clamped to the shape).
    loss_auto = fused_linear_cpo_loss(
        lin_weight, _input, target, bias,
        ignore_index=ignore_index, beta=beta, alpha=alpha,
        compute_nll_loss=True,
    )
    loss_auto = jax.block_until_ready(loss_auto)

    assert jnp.isfinite(loss_small) and jnp.isfinite(loss_auto), "loss not finite"
    assert jnp.allclose(loss_small, ref, rtol=1e-3, atol=1e-3), (loss_small, ref)
    assert jnp.allclose(loss_auto, ref, rtol=1e-3, atol=1e-3), (loss_auto, ref)

    print("KERNEL_OK")
</pallas_src>

<mosaic_0001>
module attributes {stable_mosaic.version = 11 : i64} {
  func.func @_cpo_logp_kernel(%arg0: i32, %arg1: i32, %arg2: memref<128x32xbf16, #tpu.memory_space<vmem>>, %arg3: memref<128x32xbf16, #tpu.memory_space<vmem>>, %arg4: memref<128x1xf32, #tpu.memory_space<vmem>>, %arg5: memref<1x128xi32, #tpu.memory_space<vmem>>, %arg6: memref<1x128xf32, #tpu.memory_space<vmem>>, %arg7: memref<1x128xf32, #tpu.memory_space<vmem>>, %arg8: memref<1x128xf32, #tpu.memory_space<vmem>>, %arg9: memref<1x128xf32, #tpu.memory_space<vmem>>) attributes {dimension_semantics = [#tpu.dimension_semantics<parallel>, #tpu.dimension_semantics<arbitrary>], iteration_bounds = array<i64: 2, 2>, scalar_prefetch = 0 : i64, scratch_operands = 3 : i64, tpu.core_type = #tpu.core_type<tc>, window_params = [{pipeline_mode = #tpu.pipeline_mode<synchronous>, transform_indices = @transform_0, window_bounds = array<i64: 128, 32>}, {transform_indices = @transform_1, window_bounds = array<i64: 128, 32>}, {transform_indices = @transform_2, window_bounds = array<i64: 128, 1>}, {pipeline_mode = #tpu.pipeline_mode<synchronous>, transform_indices = @transform_3, window_bounds = array<i64: 1, 128>}, {transform_indices = @transform_4, window_bounds = array<i64: 1, 128>}]} {
    %c0_i32 = arith.constant 0 : i32
    %0 = arith.cmpi eq, %arg1, %c0_i32 : i32
    %1 = arith.extui %0 : i1 to i32
    %c0_i32_0 = arith.constant 0 : i32
    %2 = arith.cmpi ne, %1, %c0_i32_0 : i32
    scf.if %2 {
      %cst_25 = arith.constant 0xFF800000 : f32
      %42 = vector.broadcast %cst_25 : f32 to vector<1x128xf32>
      %c0_26 = arith.constant 0 : index
      %c0_27 = arith.constant 0 : index
      %43 = vector.load %arg7[%c0_26, %c0_27] : memref<1x128xf32, #tpu.memory_space<vmem>>, vector<1x128xf32>
      tpu.vector_store %arg7[%c0_26, %c0_27], %42 {strides = array<i32>} : memref<1x128xf32, #tpu.memory_space<vmem>>, vector<1x128xf32>,
      %cst_28 = arith.constant 0.000000e+00 : f32
      %44 = vector.broadcast %cst_28 : f32 to vector<1x128xf32>
      %c0_29 = arith.constant 0 : index
      %c0_30 = arith.constant 0 : index
      %45 = vector.load %arg8[%c0_29, %c0_30] : memref<1x128xf32, #tpu.memory_space<vmem>>, vector<1x128xf32>
      tpu.vector_store %arg8[%c0_29, %c0_30], %44 {strides = array<i32>} : memref<1x128xf32, #tpu.memory_space<vmem>>, vector<1x128xf32>,
      %cst_31 = arith.constant 0.000000e+00 : f32
      %46 = vector.broadcast %cst_31 : f32 to vector<1x128xf32>
      %c0_32 = arith.constant 0 : index
      %c0_33 = arith.constant 0 : index
      %47 = vector.load %arg9[%c0_32, %c0_33] : memref<1x128xf32, #tpu.memory_space<vmem>>, vector<1x128xf32>
      tpu.vector_store %arg9[%c0_32, %c0_33], %46 {strides = array<i32>} : memref<1x128xf32, #tpu.memory_space<vmem>>, vector<1x128xf32>,
    } else {
    }
    %c0 = arith.constant 0 : index
    %c0_1 = arith.constant 0 : index
    %3 = vector.load %arg3[%c0, %c0_1] : memref<128x32xbf16, #tpu.memory_space<vmem>>, vector<128x32xbf16>
    %c0_2 = arith.constant 0 : index
    %c0_3 = arith.constant 0 : index
    %4 = vector.load %arg2[%c0_2, %c0_3] : memref<128x32xbf16, #tpu.memory_space<vmem>>, vector<128x32xbf16>
    %cst = arith.constant dense<0.000000e+00> : vector<128x128xf32>
    %5 = tpu.matmul %3, %4, %cst {dimension_numbers = #tpu.dot_dimension_numbers<[1], [1], [0], [0], [0, 0, 1, 0], [], []>} : vector<128x32xbf16>, vector<128x32xbf16>, vector<128x128xf32> -> vector<128x128xf32>
    %c0_4 = arith.constant 0 : index
    %c0_5 = arith.constant 0 : index
    %6 = vector.load %arg4[%c0_4, %c0_5] : memref<128x1xf32, #tpu.memory_space<vmem>>, vector<128x1xf32>
    %7 = vector.broadcast %6 : vector<128x1xf32> to vector<128x128xf32>
    %8 = arith.addf %5, %7 : vector<128x128xf32>
    %c0_6 = arith.constant 0 : index
    %c0_7 = arith.constant 0 : index
    %9 = vector.load %arg7[%c0_6, %c0_7] : memref<1x128xf32, #tpu.memory_space<vmem>>, vector<1x128xf32>
    %cst_8 = arith.constant dense<0xFF800000> : vector<128xf32>
    %10 = vector.multi_reduction <maximumf>, %8, %cst_8 [0] : vector<128x128xf32> to vector<128xf32>
    %11 = vector.shape_cast %10 : vector<128xf32> to vector<1x128xf32>
    %12 = arith.maximumf %9, %11 : vector<1x128xf32>
    %13 = arith.subf %9, %12 : vector<1x128xf32>
    %14 = math.exp %13 : vector<1x128xf32>
    %c0_9 = arith.constant 0 : index
    %c0_10 = arith.constant 0 : index
    %15 = vector.load %arg8[%c0_9, %c0_10] : memref<1x128xf32, #tpu.memory_space<vmem>>, vector<1x128xf32>
    %16 = arith.mulf %14, %15 : vector<1x128xf32>
    %17 = vector.broadcast %12 : vector<1x128xf32> to vector<128x128xf32>
    %18 = arith.subf %8, %17 : vector<128x128xf32>
    %19 = math.exp %18 : vector<128x128xf32>
    %cst_11 = arith.constant dense<0.000000e+00> : vector<128xf32>
    %20 = vector.multi_reduction <add>, %19, %cst_11 [0] : vector<128x128xf32> to vector<128xf32>
    %21 = vector.shape_cast %20 : vector<128xf32> to vector<1x128xf32>
    %22 = arith.addf %16, %21 : vector<1x128xf32>
    %c0_12 = arith.constant 0 : index
    %c0_13 = arith.constant 0 : index
    %23 = vector.load %arg8[%c0_12, %c0_13] : memref<1x128xf32, #tpu.memory_space<vmem>>, vector<1x128xf32>
    tpu.vector_store %arg8[%c0_12, %c0_13], %22 {strides = array<i32>} : memref<1x128xf32, #tpu.memory_space<vmem>>, vector<1x128xf32>,
    %c0_14 = arith.constant 0 : index
    %c0_15 = arith.constant 0 : index
    %24 = vector.load %arg7[%c0_14, %c0_15] : memref<1x128xf32, #tpu.memory_space<vmem>>, vector<1x128xf32>
    tpu.vector_store %arg7[%c0_14, %c0_15], %12 {strides = array<i32>} : memref<1x128xf32, #tpu.memory_space<vmem>>, vector<1x128xf32>,
    %c0_16 = arith.constant 0 : index
    %c0_17 = arith.constant 0 : index
    %25 = vector.load %arg5[%c0_16, %c0_17] : memref<1x128xi32, #tpu.memory_space<vmem>>, vector<1x128xi32>
    %c128_i32 = arith.constant 128 : i32
    %26 = arith.muli %arg1, %c128_i32 : i32
    %27 = vector.broadcast %26 : i32 to vector<1x128xi32>
    %28 = arith.subi %25, %27 : vector<1x128xi32>
    %29 = tpu.iota {dimensions = array<i32: 0>} : vector<128x128xi32>
    %c0_18 = arith.constant 0 : index
    %c0_19 = arith.constant 0 : index
    %30 = vector.load %arg9[%c0_18, %c0_19] : memref<1x128xf32, #tpu.memory_space<vmem>>, vector<1x128xf32>
    %31 = vector.broadcast %28 : vector<1x128xi32> to vector<128x128xi32>
    %32 = arith.cmpi eq, %29, %31 : vector<128x128xi32>
    %cst_20 = arith.constant 0.000000e+00 : f32
    %33 = vector.broadcast %cst_20 : f32 to vector<128x128xf32>
    %34 = arith.select %32, %8, %33 : vector<128x128xi1>, vector<128x128xf32>
    %cst_21 = arith.constant dense<0.000000e+00> : vector<128xf32>
    %35 = vector.multi_reduction <add>, %34, %cst_21 [0] : vector<128x128xf32> to vector<128xf32>
    %36 = vector.shape_cast %35 : vector<128xf32> to vector<1x128xf32>
    %37 = arith.addf %30, %36 : vector<1x128xf32>
    %c0_22 = arith.constant 0 : index
    %c0_23 = arith.constant 0 : index
    %38 = vector.load %arg9[%c0_22, %c0_23] : memref<1x128xf32, #tpu.memory_space<vmem>>, vector<1x128xf32>
    tpu.vector_store %arg9[%c0_22, %c0_23], %37 {strides = array<i32>} : memref<1x128xf32, #tpu.memory_space<vmem>>, vector<1x128xf32>,
    %c1_i32 = arith.constant 1 : i32
    %39 = arith.cmpi eq, %arg1, %c1_i32 : i32
    %40 = arith.extui %39 : i1 to i32
    %c0_i32_24 = arith.constant 0 : i32
    %41 = arith.cmpi ne, %40, %c0_i32_24 : i32
    scf.if %41 {
      %c0_25 = arith.constant 0 : index
      %c0_26 = arith.constant 0 : index
      %42 = vector.load %arg9[%c0_25, %c0_26] : memref<1x128xf32, #tpu.memory_space<vmem>>, vector<1x128xf32>
      %c0_27 = arith.constant 0 : index
      %c0_28 = arith.constant 0 : index
      %43 = vector.load %arg7[%c0_27, %c0_28] : memref<1x128xf32, #tpu.memory_space<vmem>>, vector<1x128xf32>
      %c0_29 = arith.constant 0 : index
      %c0_30 = arith.constant 0 : index
      %44 = vector.load %arg8[%c0_29, %c0_30] : memref<1x128xf32, #tpu.memory_space<vmem>>, vector<1x128xf32>
      %45 = math.log %44 : vector<1x128xf32>
      %46 = arith.addf %43, %45 : vector<1x128xf32>
      %47 = arith.subf %42, %46 : vector<1x128xf32>
      %c0_31 = arith.constant 0 : index
      %c0_32 = arith.constant 0 : index
      %48 = vector.load %arg6[%c0_31, %c0_32] : memref<1x128xf32, #tpu.memory_space<vmem>>, vector<1x128xf32>
      tpu.vector_store %arg6[%c0_31, %c0_32], %47 {strides = array<i32>} : memref<1x128xf32, #tpu.memory_space<vmem>>, vector<1x128xf32>,
    } else {
    }
    return
  }
  func.func @transform_0(%arg0: i32, %arg1: i32) -> (i32, i32) {
    %c0_i32 = arith.constant 0 : i32
    %c0_i32_0 = arith.constant 0 : i32
    return %arg0, %c0_i32 : i32, i32
  }
  func.func @transform_1(%arg0: i32, %arg1: i32) -> (i32, i32) {
    %c0_i32 = arith.constant 0 : i32
    %c0_i32_0 = arith.constant 0 : i32
    return %arg1, %c0_i32 : i32, i32
  }
  func.func @transform_2(%arg0: i32, %arg1: i32) -> (i32, i32) {
    %c0_i32 = arith.constant 0 : i32
    %c0_i32_0 = arith.constant 0 : i32
    return %arg1, %c0_i32 : i32, i32
  }
  func.func @transform_3(%arg0: i32, %arg1: i32) -> (i32, i32) {
    %c0_i32 = arith.constant 0 : i32
    %c0_i32_0 = arith.constant 0 : i32
    return %c0_i32, %arg0 : i32, i32
  }
  func.func @transform_4(%arg0: i32, %arg1: i32) -> (i32, i32) {
    %c0_i32 = arith.constant 0 : i32
    %c0_i32_0 = arith.constant 0 : i32
    return %c0_i32, %arg0 : i32, i32
  }
}

module attributes {stable_mosaic.version = 11 : i64} {
  func.func @_cpo_logp_kernel(%arg0: i32, %arg1: i32, %arg2: memref<128x32xbf16, #tpu.memory_space<vmem>>, %arg3: memref<128x32xbf16, #tpu.memory_space<vmem>>, %arg4: memref<128x1xf32, #tpu.memory_space<vmem>>, %arg5: memref<1x128xi32, #tpu.memory_space<vmem>>, %arg6: memref<1x128xf32, #tpu.memory_space<vmem>>, %arg7: memref<1x128xf32, #tpu.memory_space<vmem>>, %arg8: memref<1x128xf32, #tpu.memory_space<vmem>>, %arg9: memref<1x128xf32, #tpu.memory_space<vmem>>) attributes {dimension_semantics = [#tpu.dimension_semantics<parallel>, #tpu.dimension_semantics<arbitrary>], iteration_bounds = array<i64: 2, 2>, scalar_prefetch = 0 : i64, scratch_operands = 3 : i64, tpu.core_type = #tpu.core_type<tc>, window_params = [{transform_indices = @transform_0, window_bounds = array<i64: 128, 32>}, {transform_indices = @transform_1, window_bounds = array<i64: 128, 32>}, {transform_indices = @transform_2, window_bounds = array<i64: 128, 1>}, {transform_indices = @transform_3, window_bounds = array<i64: 1, 128>}, {transform_indices = @transform_4, window_bounds = array<i64: 1, 128>}]} {
    %c0_i32 = arith.constant 0 : i32
    %0 = arith.cmpi eq, %arg1, %c0_i32 : i32
    %1 = arith.extui %0 : i1 to i32
    %c0_i32_0 = arith.constant 0 : i32
    %2 = arith.cmpi ne, %1, %c0_i32_0 : i32
    scf.if %2 {
      %cst_25 = arith.constant 0xFF800000 : f32
      %42 = vector.broadcast %cst_25 : f32 to vector<1x128xf32>
      %c0_26 = arith.constant 0 : index
      %c0_27 = arith.constant 0 : index
      %43 = vector.load %arg7[%c0_26, %c0_27] : memref<1x128xf32, #tpu.memory_space<vmem>>, vector<1x128xf32>
      tpu.vector_store %arg7[%c0_26, %c0_27], %42 {strides = array<i32>} : memref<1x128xf32, #tpu.memory_space<vmem>>, vector<1x128xf32>,
      %cst_28 = arith.constant 0.000000e+00 : f32
      %44 = vector.broadcast %cst_28 : f32 to vector<1x128xf32>
      %c0_29 = arith.constant 0 : index
      %c0_30 = arith.constant 0 : index
      %45 = vector.load %arg8[%c0_29, %c0_30] : memref<1x128xf32, #tpu.memory_space<vmem>>, vector<1x128xf32>
      tpu.vector_store %arg8[%c0_29, %c0_30], %44 {strides = array<i32>} : memref<1x128xf32, #tpu.memory_space<vmem>>, vector<1x128xf32>,
      %cst_31 = arith.constant 0.000000e+00 : f32
      %46 = vector.broadcast %cst_31 : f32 to vector<1x128xf32>
      %c0_32 = arith.constant 0 : index
      %c0_33 = arith.constant 0 : index
      %47 = vector.load %arg9[%c0_32, %c0_33] : memref<1x128xf32, #tpu.memory_space<vmem>>, vector<1x128xf32>
      tpu.vector_store %arg9[%c0_32, %c0_33], %46 {strides = array<i32>} : memref<1x128xf32, #tpu.memory_space<vmem>>, vector<1x128xf32>,
    } else {
    }
    %c0 = arith.constant 0 : index
    %c0_1 = arith.constant 0 : index
    %3 = vector.load %arg3[%c0, %c0_1] : memref<128x32xbf16, #tpu.memory_space<vmem>>, vector<128x32xbf16>
    %c0_2 = arith.constant 0 : index
    %c0_3 = arith.constant 0 : index
    %4 = vector.load %arg2[%c0_2, %c0_3] : memref<128x32xbf16, #tpu.memory_space<vmem>>, vector<128x32xbf16>
    %cst = arith.constant dense<0.000000e+00> : vector<128x128xf32>
    %5 = tpu.matmul %3, %4, %cst {dimension_numbers = #tpu.dot_dimension_numbers<[1], [1], [0], [0], [0, 0, 1, 0], [], []>} : vector<128x32xbf16>, vector<128x32xbf16>, vector<128x128xf32> -> vector<128x128xf32>
    %c0_4 = arith.constant 0 : index
    %c0_5 = arith.constant 0 : index
    %6 = vector.load %arg4[%c0_4, %c0_5] : memref<128x1xf32, #tpu.memory_space<vmem>>, vector<128x1xf32>
    %7 = vector.broadcast %6 : vector<128x1xf32> to vector<128x128xf32>
    %8 = arith.addf %5, %7 : vector<128x128xf32>
    %c0_6 = arith.constant 0 : index
    %c0_7 = arith.constant 0 : index
    %9 = vector.load %arg7[%c0_6, %c0_7] : memref<1x128xf32, #tpu.memory_space<vmem>>, vector<1x128xf32>
    %cst_8 = arith.constant dense<0xFF800000> : vector<128xf32>
    %10 = vector.multi_reduction <maximumf>, %8, %cst_8 [0] : vector<128x128xf32> to vector<128xf32>
    %11 = vector.shape_cast %10 : vector<128xf32> to vector<1x128xf32>
    %12 = arith.maximumf %9, %11 : vector<1x128xf32>
    %13 = arith.subf %9, %12 : vector<1x128xf32>
    %14 = math.exp %13 : vector<1x128xf32>
    %c0_9 = arith.constant 0 : index
    %c0_10 = arith.constant 0 : index
    %15 = vector.load %arg8[%c0_9, %c0_10] : memref<1x128xf32, #tpu.memory_space<vmem>>, vector<1x128xf32>
    %16 = arith.mulf %14, %15 : vector<1x128xf32>
    %17 = vector.broadcast %12 : vector<1x128xf32> to vector<128x128xf32>
    %18 = arith.subf %8, %17 : vector<128x128xf32>
    %19 = math.exp %18 : vector<128x128xf32>
    %cst_11 = arith.constant dense<0.000000e+00> : vector<128xf32>
    %20 = vector.multi_reduction <add>, %19, %cst_11 [0] : vector<128x128xf32> to vector<128xf32>
    %21 = vector.shape_cast %20 : vector<128xf32> to vector<1x128xf32>
    %22 = arith.addf %16, %21 : vector<1x128xf32>
    %c0_12 = arith.constant 0 : index
    %c0_13 = arith.constant 0 : index
    %23 = vector.load %arg8[%c0_12, %c0_13] : memref<1x128xf32, #tpu.memory_space<vmem>>, vector<1x128xf32>
    tpu.vector_store %arg8[%c0_12, %c0_13], %22 {strides = array<i32>} : memref<1x128xf32, #tpu.memory_space<vmem>>, vector<1x128xf32>,
    %c0_14 = arith.constant 0 : index
    %c0_15 = arith.constant 0 : index
    %24 = vector.load %arg7[%c0_14, %c0_15] : memref<1x128xf32, #tpu.memory_space<vmem>>, vector<1x128xf32>
    tpu.vector_store %arg7[%c0_14, %c0_15], %12 {strides = array<i32>} : memref<1x128xf32, #tpu.memory_space<vmem>>, vector<1x128xf32>,
    %c0_16 = arith.constant 0 : index
    %c0_17 = arith.constant 0 : index
    %25 = vector.load %arg5[%c0_16, %c0_17] : memref<1x128xi32, #tpu.memory_space<vmem>>, vector<1x128xi32>
    %c128_i32 = arith.constant 128 : i32
    %26 = arith.muli %arg1, %c128_i32 : i32
    %27 = vector.broadcast %26 : i32 to vector<1x128xi32>
    %28 = arith.subi %25, %27 : vector<1x128xi32>
    %29 = tpu.iota {dimensions = array<i32: 0>} : vector<128x128xi32>
    %c0_18 = arith.constant 0 : index
    %c0_19 = arith.constant 0 : index
    %30 = vector.load %arg9[%c0_18, %c0_19] : memref<1x128xf32, #tpu.memory_space<vmem>>, vector<1x128xf32>
    %31 = vector.broadcast %28 : vector<1x128xi32> to vector<128x128xi32>
    %32 = arith.cmpi eq, %29, %31 : vector<128x128xi32>
    %cst_20 = arith.constant 0.000000e+00 : f32
    %33 = vector.broadcast %cst_20 : f32 to vector<128x128xf32>
    %34 = arith.select %32, %8, %33 : vector<128x128xi1>, vector<128x128xf32>
    %cst_21 = arith.constant dense<0.000000e+00> : vector<128xf32>
    %35 = vector.multi_reduction <add>, %34, %cst_21 [0] : vector<128x128xf32> to vector<128xf32>
    %36 = vector.shape_cast %35 : vector<128xf32> to vector<1x128xf32>
    %37 = arith.addf %30, %36 : vector<1x128xf32>
    %c0_22 = arith.constant 0 : index
    %c0_23 = arith.constant 0 : index
    %38 = vector.load %arg9[%c0_22, %c0_23] : memref<1x128xf32, #tpu.memory_space<vmem>>, vector<1x128xf32>
    tpu.vector_store %arg9[%c0_22, %c0_23], %37 {strides = array<i32>} : memref<1x128xf32, #tpu.memory_space<vmem>>, vector<1x128xf32>,
    %c1_i32 = arith.constant 1 : i32
    %39 = arith.cmpi eq, %arg1, %c1_i32 : i32
    %40 = arith.extui %39 : i1 to i32
    %c0_i32_24 = arith.constant 0 : i32
    %41 = arith.cmpi ne, %40, %c0_i32_24 : i32
    scf.if %41 {
      %c0_25 = arith.constant 0 : index
      %c0_26 = arith.constant 0 : index
      %42 = vector.load %arg9[%c0_25, %c0_26] : memref<1x128xf32, #tpu.memory_space<vmem>>, vector<1x128xf32>
      %c0_27 = arith.constant 0 : index
      %c0_28 = arith.constant 0 : index
      %43 = vector.load %arg7[%c0_27, %c0_28] : memref<1x128xf32, #tpu.memory_space<vmem>>, vector<1x128xf32>
      %c0_29 = arith.constant 0 : index
      %c0_30 = arith.constant 0 : index
      %44 = vector.load %arg8[%c0_29, %c0_30] : memref<1x128xf32, #tpu.memory_space<vmem>>, vector<1x128xf32>
      %45 = math.log %44 : vector<1x128xf32>
      %46 = arith.addf %43, %45 : vector<1x128xf32>
      %47 = arith.subf %42, %46 : vector<1x128xf32>
      %c0_31 = arith.constant 0 : index
      %c0_32 = arith.constant 0 : index
      %48 = vector.load %arg6[%c0_31, %c0_32] : memref<1x128xf32, #tpu.memory_space<vmem>>, vector<1x128xf32>
      tpu.vector_store %arg6[%c0_31, %c0_32], %47 {strides = array<i32>} : memref<1x128xf32, #tpu.memory_space<vmem>>, vector<1x128xf32>,
    } else {
    }
    return
  }
  func.func @transform_0(%arg0: i32, %arg1: i32) -> (i32, i32) {
    %c0_i32 = arith.constant 0 : i32
    %c0_i32_0 = arith.constant 0 : i32
    return %arg0, %c0_i32 : i32, i32
  }
  func.func @transform_1(%arg0: i32, %arg1: i32) -> (i32, i32) {
    %c0_i32 = arith.constant 0 : i32
    %c0_i32_0 = arith.constant 0 : i32
    return %arg1, %c0_i32 : i32, i32
  }
  func.func @transform_2(%arg0: i32, %arg1: i32) -> (i32, i32) {
    %c0_i32 = arith.constant 0 : i32
    %c0_i32_0 = arith.constant 0 : i32
    return %arg1, %c0_i32 : i32, i32
  }
  func.func @transform_3(%arg0: i32, %arg1: i32) -> (i32, i32) {
    %c0_i32 = arith.constant 0 : i32
    %c0_i32_0 = arith.constant 0 : i32
    return %c0_i32, %arg0 : i32, i32
  }
  func.func @transform_4(%arg0: i32, %arg1: i32) -> (i32, i32) {
    %c0_i32 = arith.constant 0 : i32
    %c0_i32_0 = arith.constant 0 : i32
    return %c0_i32, %arg0 : i32, i32
  }
}

</mosaic_0001>

<bundles_post_ra>
// kernel: tpu_custom_call.1
= control target key start
LH: loop header
LB: loop body
LE: loop exit
PB: predicated region body
PF: predicated region fallthrough
CT: control target
= control target key end

     0   :  { %s2209_s0 = inlined_call_operand.hbm [shape: bf16[256,32], index: 0, kind: input, shape index: {}]   ;;  %s2210_s1 = inlined_call_operand.hbm [shape: bf16[256,32], index: 1, kind: input, shape index: {}]   ;;  %s2211_s2 = inlined_call_operand.hbm [shape: f32[256,1], index: 2, kind: input, shape index: {}]   ;;  %s2212_s3 = inlined_call_operand.hbm [shape: s32[1,256], index: 3, kind: input, shape index: {}]   ;;  %s2213_s4 = inlined_call_operand.hbm [shape: f32[1,256], index: 4, kind: output, shape index: {}]  }
   0x1   :  { %2232 = sst [smem:[#allocation27_spill]] %s2210_s1 }
   0x2   :  { %9 = vsyncpa [#allocation6], 0 }
   0x3   :  { %10 = vsyncpa [#allocation9], 0 }
   0x4   :  { %12 = vsyncpa [#allocation9 + $0x1], 0 }
   0x5   :  { %13 = vsyncpa [#allocation12], 0 }
   0x6   :  { %14 = vsyncpa [#allocation7], 0 }
   0x7   :  { %16 = vsyncpa [#allocation7 + $0x1], 0  ;;  %s1606_s15 = smov 0   ;;  %s1608_s16 = smov 0  }
   0x8   :  { %s1610_s17 = smov 0   ;;  %s1612_s18 = smov 0  }
   0x9   :  { %s1614_s19 = smov 0   ;;  %s1616_s20 = smov 0  }
   0xa   :  { %s1618_s21 = smov 0   ;;  %s1620_s22 = smov 0  }
   0xb   :  { %s1622_s23 = smov 0   ;;  %s1624_s24 = smov 0  }
   0xc   :  { %s1626_s25 = smov 0  }
   0xd LB: > { %2233 = sst [smem:[#allocation18_spill]] %s1535_s17  ;;  %s31_s26 = sadd.s32 1, %s1559_s23  ;;  %s1567_s25 = sphi %s1626_s25, %s22_s25   ;;  %s1563_s24 = sphi %s1624_s24, %s2272_s24   ;;  %s1559_s23 = sphi %s1622_s23, %s2278_s23   ;;  %s1555_s22 = sphi %s1620_s22, %s2270_s22   ;;  %s1551_s21 = sphi %s1618_s21, %s2277_s21   ;;  %s1547_s20 = sphi %s1616_s20, %s2269_s20   ;;  %s1543_s19 = sphi %s1614_s19, %s2276_s19   ;;  %s1539_s18 = sphi %s1612_s18, %s2275_s18   ;;  %s1535_s17 = sphi %s1610_s17, %s2267_s17   ;;  %s1531_s16 = sphi %s1608_s16, %s2274_s16   ;;  %s1527_s15 = sphi %s1606_s15, %s2273_s15  }
   0xe   : > { %2234 = sst [smem:[#allocation19_spill]] %s1539_s18  ;;  %s34_s27 = sadd.s32 1, %s1563_s24 }
   0xf   : > { %2235 = sst [smem:[#allocation20_spill]] %s1547_s20  ;;  %p32_p0 = scmp.ge.s32.totalorder %s31_s26, 2 }
  0x10   : > { %2236 = sst [smem:[#allocation21_spill]] %s1563_s24  ;;  %s67_s28 = sadd.s32 1, %s1535_s17 }
  0x11   : > { %p74_p1 = scmp.ne.s32.totalorder %s1535_s17, %s1531_s16  ;;  %p75_p2 = scmp.eq.s32.totalorder %s1567_s25, 0 }
  0x12   : > { %s2280_s26 = smov (%p32_p0, %s31_s26), 0  ;;  %s2282_s27 = smov (!%p32_p0, %s34_s27), %s1563_s24 }
  0x13   : > { %2237 = sst [smem:[#allocation22_spill]] %s2280_s26  ;;  %s64_s29 = ssub.s32 %s1559_s23, %s2280_s26 }
  0x14   : > { %p1672_p3 = por %p75_p2, %p74_p1  ;;  %p36_p4 = scmp.ge.s32.totalorder %s2282_s27, 2 }
  0x15   : > { %p65_p5 = scmp.eq.s32.totalorder %s64_s29, 0  ;;  %p1164_p7 = scmp.lt.s32.totalorder %s1567_s25, 4 }
  0x16   : > { %s2284_s27 = smov (%p36_p4, %s2282_s27), 0  ;;  %s211_s8 = sand.u32 1, %s1567_s25  }
  0x17   : > { %2239 = sst [smem:[#allocation23_spill]] %s2284_s27  ;;  %s38_s6 = ssub.s32 %s1563_s24, %s2284_s27 }
  0x18   : > { %s1679_s5 = scalar_select %p65_p5, %s1535_s17, %s67_s28  }
  0x19   : > { %p1683_p6 = scmp.eq.s32.totalorder %s38_s6, 0  ;;  %s213_s9 = sand.u32 1, %s1535_s17  }
  0x1a   : > { %2240 = sst [smem:[#allocation24_spill]] %s1679_s5  ;;  %s1014_s10 = sshll.u32 %s213_s9, 6 }
  0x1b   : > { %s1054_s11 = sshll.u32 %s1559_s23, 10  ;;  %s2242_s1 = sld [smem:[#allocation27_spill]] }
  0x1c   : > { %s215_s28 = scalar_lea.vmem [#allocation8], %s1014_s10  ;;  %p1700_p8 = pnand %p1164_p7, %p1672_p3 }
  0x1d   : > { %s222_s29 = sshll.u32 %s215_s28, 4  ;;  %s1704_s27 = sshll.u32 %s213_s9, 7  ;;  %s1696_s29 = int_to_ptr.vmem [resolvable:$true] %s222_s29 }
  0x1e   : > { %s2243_s6 = scalar_select %p1700_p8, 1, 0 }
  0x1f   : > { %s1706_s12 = scalar_lea.sflag [#allocation9], %s211_s8  ;;  %p2216_p10 = pneg %p1700_p8 }
  0x21   : > { %s1694_s14 = scalar_lea.hbm %s2242_s1, %s1054_s11  ;;  %s1322_s13 = scalar_lea.hbm %s2242_s1, 2048 }
  0x22   : > { %s1317_s11 = scalar_lea.hbm %s1694_s14, 1024  ;;  %p1323_p13 = scmp.lt.u32.totalorder %s1694_s14, %s2242_s1 }
  0x23   : > { %p1318_p9 = scmp.ne.s32.totalorder %s1694_s14, %s1317_s11  ;;  %p1324_p0 = scmp.lt.u32.totalorder %s1322_s13, %s1317_s11 }
  0x24   : > { %p1326_p2 = scmp.lt.u32.totalorder %s1317_s11, %s1694_s14 }
  0x25   : > { %p1320_p11 = pnand %p2216_p10, %p1318_p9  ;;  %p1325_p1 = por %p1324_p0, %p1323_p13 }
  0x27   : > { %p1321_p12 = pneg %p1320_p11  ;;  %p1327_p3 = por %p1326_p2, %p1325_p1 }
  0x29   : > { %p1328_p4 = pnand %p1327_p3, %p1321_p12 }
  0x2b   : > { %1331 = shalt.err (!%p1328_p4)
}
  0x2c   : > { %s1332_s8 = scalar_lea.vmem %s1696_s29, 1024  ;;  %s1569_s9 = smov [#allocation8]  }
  0x2d   : > { %p1333_p5 = scmp.ne.s32.totalorder %s1696_s29, %s1332_s8  ;;  %s1337_s10 = sshll.u32 %s1569_s9, 4  ;;  %s1338_s10 = int_to_ptr.vmem [resolvable:$false] %s1337_s10 }
  0x2e   : > { %s1339_s26 = scalar_lea.vmem %s1338_s10, 2048  ;;  %p1340_p11 = scmp.lt.s32.totalorder %s1696_s29, %s1338_s10 }
  0x2f   : > { %p1335_p7 = pnand %p1333_p5, %p2216_p10  ;;  %p1341_p13 = scmp.lt.s32.totalorder %s1339_s26, %s1332_s8 }
  0x31   : > { %p1336_p9 = pneg %p1335_p7  ;;  %p1342_p0 = por %p1341_p13, %p1340_p11 }
  0x33   : > { %p1343_p1 = pnand %p1342_p0, %p1336_p9 }
  0x35   : > { %1346 = shalt.err (!%p1343_p1)
}
  0x36   : > { %s2217_s11 = smov 64   ;;  %s2218_s30 = smov 4  }
  0x37   : > { %1156 = dma.hbm_to_vmem [thread:$0]  (!%p1700_p8), %s1694_s14, 1024, %s1696_s29, %s1706_s12, %s2217_s11, %s2217_s11, %s2218_s30  }
  0x38   : > { %s236_s13 = scalar_lea.vmem [#allocation10], %s1704_s27  ;;  %s1741_s8 = sadd.s32 4294967295, %s1567_s25  }
  0x39   : > { %s1738_s28 = sshll.u32 %s236_s13, 4  ;;  %s1008_s9 = sadd.s32 4294967294, %s1567_s25   ;;  %s1869_s28 = int_to_ptr.vmem [resolvable:$true] %s1738_s28 }
  0x3a   : > { %s41_s10 = sadd.s32 1, %s1547_s20  ;;  %p54_p12 = scmp.ne.s32.totalorder %s1543_s19, %s1539_s18 }
  0x3b   : > { %s1750_s26 = scalar_select %p1683_p6, %s1547_s20, %s41_s10  }
  0x3c   : > { %p55_p2 = scmp.eq.s32.totalorder %s1741_s8, 0  ;;  %p80_p3 = scmp.ne.s32.totalorder %s1531_s16, %s1527_s15 }
  0x3d   : > { %2244 = sst [smem:[#allocation25_spill]] %s1750_s26  ;;  %p155_p4 = scmp.ne.s32.totalorder %s1547_s20, %s1543_s19 }
  0x3e   : > { %p156_p5 = scmp.eq.s32.totalorder %s1741_s8, 3  ;;  %p1758_p7 = por %p55_p2, %p54_p12 }
  0x3f   : > { %p1762_p9 = por %p80_p3, %p55_p2  ;;  %p162_p6 = scmp.eq.s32.totalorder %s1008_s9, 3 }
  0x40   : > { %s2245_s27 = scalar_select %p1758_p7, 1, 0 }
  0x41   : > { %s2246_s14 = scalar_select %p1762_p9, 1, 0 }
  0x42   : > { %p1766_p11 = por %p156_p5, %p155_p4  ;;  %p1009_p13 = scmp.ge.s32.totalorder %s1567_s25, 1 }
  0x43   : > { %p169_p0 = scmp.lt.s32.totalorder %s1567_s25, 5  ;;  %p1772_p1 = por %p162_p6, %p54_p12 }
  0x44   : > { %s2247_s29 = scalar_select %p1766_p11, 1, 0 }
  0x45   : > { %s2248_s15 = scalar_select %p1772_p1, 1, 0 }
  0x46   : > { %s1053_s7 = sshll.u32 %s1555_s22, 10  ;;  %p1777_p10 = pnand %p1009_p13, %p169_p0 }
  0x47   : > { %2249 = sst [smem:[#allocation26_spill]] %s2248_s15  ;;  %s1784_s30 = scalar_lea.hbm %s2209_s0, %s1053_s7 }
  0x48   : > { %s2250_s13 = scalar_select %p1777_p10, 1, 0 }
  0x49   : > { %s2222_s9 = sshll.u32 %s1555_s22, 4  ;;  %p1146_p2 = pneg %p1777_p10 }
  0x4a   : > { %s1572_s1 = smov [#allocation5]   ;;  %s1796_s5 = scalar_lea.hbm %s2212_s3, %s2222_s9 }
  0x4b   : > { %s184_s24 = sshll.u32 %s1572_s1, 4  ;;  %p1800_p12 = pnand %p1146_p2, %p1758_p7  ;;  %s1789_s24 = int_to_ptr.vmem [resolvable:$true] %s184_s24 }
  0x4c   : > { %s1573_s7 = smov [#allocation11]   ;;  %s1347_s1 = scalar_lea.hbm %s1784_s30, 1024 }
  0x4d   : > { %s200_s10 = sshll.u32 %s1573_s7, 4  ;;  %p1348_p3 = scmp.ne.s32.totalorder %s1784_s30, %s1347_s1  ;;  %s1805_s10 = int_to_ptr.vmem [resolvable:$true] %s200_s10 }
  0x4e   : > { %p1349_p4 = pneg %p1800_p12  ;;  %s1352_s9 = scalar_lea.hbm %s2209_s0, 2048 }
  0x4f   : > { %p1353_p13 = scmp.lt.u32.totalorder %s1784_s30, %s2209_s0  ;;  %p1354_p0 = scmp.lt.u32.totalorder %s1352_s9, %s1347_s1 }
  0x50   : > { %p1350_p5 = pnand %p1349_p4, %p1348_p3  ;;  %p1356_p1 = scmp.lt.u32.totalorder %s1347_s1, %s1784_s30 }
  0x51   : > { %p1355_p2 = por %p1354_p0, %p1353_p13 }
  0x52   : > { %p1351_p6 = pneg %p1350_p5 }
  0x53   : > { %p1357_p11 = por %p1356_p1, %p1355_p2 }
  0x55   : > { %p1358_p9 = pnand %p1357_p11, %p1351_p6 }
  0x57   : > { %1361 = shalt.err (!%p1358_p9)
}
  0x58   : > { %s1362_s7 = scalar_lea.vmem %s1789_s24, 1024  ;;  %p1370_p10 = scmp.lt.s32.totalorder %s1789_s24, %s1789_s24 }
  0x59   : > { %p1363_p3 = scmp.ne.s32.totalorder %s1789_s24, %s1362_s7  ;;  %p1371_p8 = scmp.lt.s32.totalorder %s1362_s7, %s1362_s7 }
  0x5b   : > { %p1365_p5 = pnand %p1363_p3, %p1349_p4  ;;  %p1372_p0 = por %p1371_p8, %p1370_p10 }
  0x5d   : > { %p1366_p7 = pneg %p1365_p5 }
  0x5f   : > { %p1373_p13 = pnand %p1372_p0, %p1366_p7 }
  0x61   : > { %1376 = shalt.err (!%p1373_p13)
}
  0x62   : > { %s2252_s18 = smov 4   ;;  %s2253_s15 = smov 64  }
  0x63   : > { %1149 = dma.hbm_to_vmem [thread:$0]  (!%p1800_p12), %s1784_s30, 1024, %s1789_s24, [#allocation6], %s2253_s15, %s2253_s15, %s2252_s18  }
  0x64   : > { %s1377_s9 = scalar_lea.hbm %s1796_s5, 16  ;;  %s1382_s26 = scalar_lea.hbm %s2212_s3, 32 }
  0x65   : > { %p1378_p9 = scmp.ne.s32.totalorder %s1796_s5, %s1377_s9  ;;  %p1383_p7 = scmp.lt.u32.totalorder %s1796_s5, %s2212_s3 }
  0x66   : > { %p1384_p11 = scmp.lt.u32.totalorder %s1382_s26, %s1377_s9  ;;  %p1386_p6 = scmp.lt.u32.totalorder %s1377_s9, %s1796_s5 }
  0x67   : > { %p1380_p8 = pnand %p1378_p9, %p1349_p4 }
  0x68   : > { %p1385_p1 = por %p1384_p11, %p1383_p7 }
  0x69   : > { %p1381_p10 = pneg %p1380_p8 }
  0x6a   : > { %p1387_p2 = por %p1386_p6, %p1385_p1 }
  0x6c   : > { %p1388_p3 = pnand %p1387_p2, %p1381_p10 }
  0x6e   : > { %1391 = shalt.err (!%p1388_p3)
}
  0x6f   : > { %s1392_s24 = scalar_lea.vmem %s1805_s10, 16  ;;  %s1399_s30 = scalar_lea.vmem %s1805_s10, 32 }
  0x70   : > { %p1393_p5 = scmp.ne.s32.totalorder %s1805_s10, %s1392_s24  ;;  %p1400_p9 = scmp.lt.s32.totalorder %s1805_s10, %s1805_s10 }
  0x71   : > { %p1401_p8 = scmp.lt.s32.totalorder %s1399_s30, %s1392_s24 }
  0x72   : > { %p1395_p0 = pnand %p1393_p5, %p1349_p4 }
  0x73   : > { %p1402_p7 = por %p1401_p8, %p1400_p9 }
  0x74   : > { %p1396_p13 = pneg %p1395_p0 }
  0x76   : > { %p1403_p11 = pnand %p1402_p7, %p1396_p13 }
  0x78   : > { %1406 = shalt.err (!%p1403_p11)
}
  0x79   : > { %1152 = dma.hbm_to_vmem [thread:$0]  (!%p1800_p12), %s1796_s5, 16, %s1805_s10, [#allocation12]  }
  0x7a   : > { %s2254_s17 = sshll.u32 %s1559_s23, 11  ;;  %p2255_p10 = scmp.ne.s32.totalorder %s2243_s6, 0 }
  0x7b   : > { %s1866_s9 = scalar_lea.hbm %s2211_s2, %s2254_s17  ;;  %s1412_s10 = scalar_lea.hbm %s2211_s2, 4096 }
  0x7c   : > { %s1407_s1 = scalar_lea.hbm %s1866_s9, 2048  ;;  %p2256_p1 = pneg %p2255_p10 }
  0x7d   : > { %p1408_p4 = scmp.ne.s32.totalorder %s1866_s9, %s1407_s1  ;;  %p1413_p12 = scmp.lt.u32.totalorder %s1866_s9, %s2211_s2 }
  0x7e   : > { %p1414_p3 = scmp.lt.u32.totalorder %s1412_s10, %s1407_s1  ;;  %p1416_p0 = scmp.lt.u32.totalorder %s1407_s1, %s1866_s9 }
  0x7f   : > { %p1410_p6 = pnand %p1408_p4, %p2256_p1 }
  0x80   : > { %p1415_p5 = por %p1414_p3, %p1413_p12 }
  0x81   : > { %p1411_p2 = pneg %p1410_p6 }
  0x82   : > { %p1417_p13 = por %p1416_p0, %p1415_p5 }
  0x84   : > { %p1418_p9 = pnand %p1417_p13, %p1411_p2 }
  0x86   : > { %1421 = shalt.err (!%p1418_p9)
}
  0x87   : > { %s1422_s7 = scalar_lea.vmem %s1869_s28, 2048  ;;  %p2257_p7 = pmov %p2256_p1 }
  0x88   : > { %p1423_p8 = scmp.ne.s32.totalorder %s1869_s28, %s1422_s7  ;;  %s1574_s24 = smov [#allocation10]  }
  0x89   : > { %s1427_s30 = sshll.u32 %s1574_s24, 4  ;;  %s1428_s30 = int_to_ptr.vmem [resolvable:$false] %s1427_s30 }
  0x8a   : > { %p1425_p11 = pnand %p1423_p8, %p2257_p7  ;;  %s1429_s17 = scalar_lea.vmem %s1428_s30, 4096 }
  0x8b   : > { %p1430_p1 = scmp.lt.s32.totalorder %s1869_s28, %s1428_s30  ;;  %p1431_p6 = scmp.lt.s32.totalorder %s1429_s17, %s1422_s7 }
  0x8c   : > { %p1426_p4 = pneg %p1425_p11 }
  0x8d   : > { %p1432_p12 = por %p1431_p6, %p1430_p1 }
  0x8f   : > { %p1433_p3 = pnand %p1432_p12, %p1426_p4 }
  0x91   : > { %1436 = shalt.err (!%p1433_p3)
}
  0x92   : > { %s1575_s18 = smov 128   ;;  %s1576_s15 = smov 8  }
  0x93   : > { %1159 = dma.hbm_to_vmem [thread:$0]  (!%p2255_p10), %s1866_s9, 2048, %s1869_s28, %s1706_s12, %s1575_s18, %s1575_s18, %s1576_s15  }
  0x94   : > { %p2258_p2 = scmp.ne.s32.totalorder %s2250_s13, 0 }
  0x95   : > { %p2259_p5 = scmp.ne.s32.totalorder (!%p2258_p2), %s2245_s27, 0 }
  0x96   : > { %255 = sbr.rel (%p2258_p2) target bundleno = 604 (0x25c), region = 36 }
  0x9d   : > { %1510 = dma.done.wait (%p2259_p5), [#allocation6], 1024  }
  0x9e   : > { %1512 = vsyncadd (%p2259_p5), [#allocation6], 4294966272  ;;  %s261_s1 = sand.u32 1, %s1741_s8   ;;  %s263_s11 = sand.u32 1, %s1531_s16  }
  0x9f   : > { %s1021_s5 = sshll.u32 %s263_s11, 6  ;;  %s262_s10 = scalar_lea.sflag [#allocation9], %s261_s1 }
  0xa0   : > { %s1903_s20 = scalar_lea.vmem [#allocation8], %s1021_s5  ;;  %p2260_p0 = scmp.ne.s32.totalorder %s2246_s14, 0 }
  0xa2   : > { %1514 = dma.done.wait (%p2260_p0), %s262_s10, 3072  }
  0xa3   : > { %1516 = vsyncadd (%p2260_p0), %s262_s10, 4294964224  ;;  %s1022_s6 = sshll.u32 %s263_s11, 7 }
  0xa4   : > { %s1909_s12 = scalar_lea.vmem [#allocation10], %s1022_s6 }
  0xa5   : > { %1518 = dma.done.wait (%p2259_p5), [#allocation12], 16  }
  0xa6   : > { %1520 = vsyncadd (%p2259_p5), [#allocation12], 4294967280  ;;  %s305_s28 = sand.u32 1, %s1543_s19   ;;  %p1023_p10 = scmp.ne.s32.totalorder %s1551_s21, 0 }
  0xa7   : > { %s1918_s8 = scalar_lea.vmem [#allocation13], %s305_s28  ;;  %v1577_v0 = vmov (!%p1023_p10), -inf   ;;  %v1578_v1 = vmov (!%p1023_p10), 0.0  }
  0xa8   : > { %314 = sbr.rel (%p1023_p10) target bundleno = 175 (0xaf), region = 56  ;;  %315 = vst [vmem:[#allocation2] sm:$0x1] (!%p1023_p10), %v1577_v0  ;;  %316 = vst [vmem:[#allocation3] sm:$0x1] (!%p1023_p10), %v1578_v1 }
  0xa9   : > { %317 = vst [vmem:[#allocation4] sm:$0x1] (!%p1023_p10), %v1578_v1 }
  0xaf PF: > { %v1265_v2 = vld [vmem:[#allocation5] sm:$0xff]   ;;  %vm526_vm0 = vcmask 261120   ;;  %v1266_v3 = vld [vmem:[#allocation5 + $0x8] sm:$0xff]   ;;  %v1579_v5 = vmov 0   ;;  %v1267_v6 = vld [vmem:[#allocation5 + $0x10] sm:$0xff]   ;;  %v701_v51 = vlaneseq  ;;  %s1048_s27 = sshll.u32 %s1551_s21, 7 }
  0xb0   : > { %1120 = vmatprep.subr.msk.bf16.mxu0 %vm526_vm0, %v1265_v2  ;;  %1121 = vmatprep.subr.msk.bf16.mxu1 %vm526_vm0, %v1265_v2  ;;  %v552_v4 = vsel %vm526_vm0, %v1265_v2, 0  ;;  %v555_v7 = vsel %vm526_vm0, %v1266_v3, 0  ;;  %v1273_v8 = vld [vmem:[%s1903_s20] sm:$0xff]   ;;  %v558_v10 = vsel %vm526_vm0, %v1267_v6, 0  ;;  %v1268_v11 = vld [vmem:[#allocation5 + $0x18] sm:$0xff]   ;;  %v352_v12 = vld [vmem:[%s1909_s12 + $0x10] sm:$0xff]  ;;  %v780_v54 = vstv %s1048_s27 }
  0xb1   : > { %1073 = vmatpush3.bf16.xpose.msra.mxu0 %v552_v4  ;;  %1112 = vmatpush3.bf16.xpose.msra.mxu1 %v552_v4  ;;  %v1274_v9 = vld [vmem:[%s1903_s20 + $0x20] sm:$0xff]   ;;  %v353_v14 = vld [vmem:[%s1909_s12 + $0x18] sm:$0xff]  ;;  %v351_v15 = vld [vmem:[%s1909_s12 + $0x8] sm:$0xff]  ;;  %v561_v18 = vsel %vm526_vm0, %v1268_v11, 0  ;;  %v1982_v52 = vshrl.u32 %v701_v51, 7  ;;  %p1049_p13 = scmp.ne.s32.totalorder %s1551_s21, 1 }
  0xb2   : > { %1122 = vmatprep.subr.msk.bf16.mxu0 %vm526_vm0, %v1266_v3  ;;  %1123 = vmatprep.subr.msk.bf16.mxu1 %vm526_vm0, %v1266_v3  ;;  %v350_v13 = vld [vmem:[%s1909_s12] sm:$0xff]  ;;  %v355_v16 = vld [vmem:[%s1909_s12 + $0x28] sm:$0xff]  ;;  %v357_v20 = vld [vmem:[%s1909_s12 + $0x38] sm:$0xff] }
  0xb3   : > { %1264 = vset.pattern.permute.xlu1 %v1579_v5  ;;  %1263 = vset.pattern.permute.xlu0 %v1579_v5  ;;  %v354_v17 = vld [vmem:[%s1909_s12 + $0x20] sm:$0xff]  ;;  %v356_v21 = vld [vmem:[%s1909_s12 + $0x30] sm:$0xff]  ;;  %v359_v22 = vld [vmem:[%s1909_s12 + $0x48] sm:$0xff]  ;;  %v703_v57 = vsub.s32 0, %v1982_v52  ;;  %v784_v62 = vadd.s32 8, %v1982_v52  ;;  %v785_v1 = vadd.s32 16, %v1982_v52 }
  0xb4   : > { %1088 = vmatprep.mubr.msk.bf16.mxu0 %vm526_vm0, %v1273_v8  ;;  %1096 = vmatprep.mubr.msk.bf16.mxu1 %vm526_vm0, %v1274_v9  ;;  %v1269_v19 = vld [vmem:[#allocation5 + $0x20] sm:$0xff]   ;;  %v1270_v25 = vld [vmem:[#allocation5 + $0x28] sm:$0xff]   ;;  %v361_v26 = vld [vmem:[%s1909_s12 + $0x58] sm:$0xff] }
  0xb5   : > { %378 = vperm.xlu1 %1264, %v352_v12   ;;  %368 = vperm.xlu0 %1263, %v350_v13   ;;  %v358_v23 = vld [vmem:[%s1909_s12 + $0x40] sm:$0xff]  ;;  %v564_v24 = vsel %vm526_vm0, %v1269_v19, 0  ;;  %v360_v27 = vld [vmem:[%s1909_s12 + $0x50] sm:$0xff]  ;;  %v363_v28 = vld [vmem:[%s1909_s12 + $0x68] sm:$0xff]  ;;  %v567_v30 = vsel %vm526_vm0, %v1270_v25, 0  ;;  %v789_v12 = vadd.s32 48, %v1982_v52 }
  0xb6   : > { %v362_v29 = vld [vmem:[%s1909_s12 + $0x60] sm:$0xff]  ;;  %v1271_v31 = vld [vmem:[#allocation5 + $0x30] sm:$0xff]   ;;  %v365_v32 = vld [vmem:[%s1909_s12 + $0x78] sm:$0xff]  ;;  %v787_v13 = vadd.s32 32, %v1982_v52 }
  0xb7   : > { %v364_v33 = vld [vmem:[%s1909_s12 + $0x70] sm:$0xff]  ;;  %v570_v34 = vsel %vm526_vm0, %v1271_v31, 0  ;;  %v1272_v35 = vld [vmem:[#allocation5 + $0x38] sm:$0xff]   ;;  %v1275_v37 = vld [vmem:[%s1903_s20 + $0x8] sm:$0xff]  }
  0xb8   : > { %v573_v36 = vsel %vm526_vm0, %v1272_v35, 0  ;;  %v1276_v38 = vld [vmem:[%s1903_s20 + $0x28] sm:$0xff]   ;;  %v1277_v39 = vld [vmem:[%s1903_s20 + $0x10] sm:$0xff]   ;;  %v1279_v41 = vld [vmem:[%s1903_s20 + $0x18] sm:$0xff]  }
  0xb9   : > { %1075 = vmatpush3.bf16.xpose.msra.mxu0 %v555_v7  ;;  %1113 = vmatpush3.bf16.xpose.msra.mxu1 %v555_v7  ;;  %v1278_v40 = vld [vmem:[%s1903_s20 + $0x30] sm:$0xff]   ;;  %v1280_v42 = vld [vmem:[%s1903_s20 + $0x38] sm:$0xff]   ;;  %v778_v53 = vld [vmem:[#allocation11] sm:$0x1]  ;;  %v786_v7 = vadd.s32 24, %v1982_v52 }
  0xba   : > { %1124 = vmatprep.subr.msk.bf16.mxu0 %vm526_vm0, %v1267_v6  ;;  %1125 = vmatprep.subr.msk.bf16.mxu1 %vm526_vm0, %v1267_v6  ;;  %v781_v58 = vsub.s32 %v778_v53, %v780_v54 }
  0xbb   : > { %383 = vperm.xlu1 %1264, %v353_v14   ;;  %373 = vperm.xlu0 %1263, %v351_v15  }
  0xbc   : > { %v1989_v61 = vrot.slane %v781_v58, %v703_v57 }
  0xbe   : > { %vm804_vm1 = vcmp.eq.s32.totalorder %v1982_v52, %v1989_v61  ;;  %vm805_vm2 = vcmp.eq.s32.totalorder %v784_v62, %v1989_v61  ;;  %vm806_vm3 = vcmp.eq.s32.totalorder %v785_v1, %v1989_v61  ;;  %vm807_vm4 = vcmp.eq.s32.totalorder %v786_v7, %v1989_v61 }
  0xbf   : > { %393 = vperm.xlu1 %1264, %v355_v16   ;;  %388 = vperm.xlu0 %1263, %v354_v17   ;;  %vm808_vm5 = vcmp.eq.s32.totalorder %v787_v13, %v1989_v61  ;;  %vm810_vm6 = vcmp.eq.s32.totalorder %v789_v12, %v1989_v61  ;;  %v794_v12 = vadd.s32 88, %v1982_v52 }
  0xc1   : > { %1077 = vmatpush3.bf16.xpose.msra.mxu0 %v558_v10  ;;  %1114 = vmatpush3.bf16.xpose.msra.mxu1 %v558_v10  ;;  %vm815_vm12 = vcmp.eq.s32.totalorder %v794_v12, %v1989_v61 }
  0xc2   : > { %1126 = vmatprep.subr.msk.bf16.mxu0 %vm526_vm0, %v1268_v11  ;;  %1127 = vmatprep.subr.msk.bf16.mxu1 %vm526_vm0, %v1268_v11 }
  0xc3   : > { %403 = vperm.xlu1 %1264, %v357_v20   ;;  %398 = vperm.xlu0 %1263, %v356_v21   ;;  %v788_v21 = vadd.s32 40, %v1982_v52 }
  0xc5   : > { %vm809_vm8 = vcmp.eq.s32.totalorder %v788_v21, %v1989_v61 }
  0xc7   : > { %413 = vperm.xlu1 %1264, %v359_v22   ;;  %408 = vperm.xlu0 %1263, %v358_v23   ;;  %v791_v23 = vadd.s32 64, %v1982_v52 }
  0xc9   : > { %1079 = vmatpush3.bf16.xpose.msra.mxu0 %v561_v18  ;;  %1115 = vmatpush3.bf16.xpose.msra.mxu1 %v561_v18  ;;  %v790_v18 = vadd.s32 56, %v1982_v52  ;;  %vm812_vm9 = vcmp.eq.s32.totalorder %v791_v23, %v1989_v61 }
  0xca   : > { %1128 = vmatprep.subr.msk.bf16.mxu0 %vm526_vm0, %v1269_v19  ;;  %1129 = vmatprep.subr.msk.bf16.mxu1 %vm526_vm0, %v1269_v19 }
  0xcb   : > { %423 = vperm.xlu1 %1264, %v361_v26   ;;  %418 = vperm.xlu0 %1263, %v360_v27   ;;  %v792_v27 = vadd.s32 72, %v1982_v52  ;;  %vm811_vm7 = vcmp.eq.s32.totalorder %v790_v18, %v1989_v61 }
  0xcd   : > { %vm813_vm10 = vcmp.eq.s32.totalorder %v792_v27, %v1989_v61 }
  0xcf   : > { %433 = vperm.xlu1 %1264, %v363_v28   ;;  %428 = vperm.xlu0 %1263, %v362_v29  }
  0xd1   : > { %1081 = vmatpush3.bf16.xpose.msra.mxu0 %v564_v24  ;;  %1116 = vmatpush3.bf16.xpose.msra.mxu1 %v564_v24 }
  0xd2   : > { %1130 = vmatprep.subr.msk.bf16.mxu0 %vm526_vm0, %v1270_v25  ;;  %1131 = vmatprep.subr.msk.bf16.mxu1 %vm526_vm0, %v1270_v25 }
  0xd3   : > { %443 = vperm.xlu1 %1264, %v365_v32   ;;  %438 = vperm.xlu0 %1263, %v364_v33  }
  0xd9   : > { %1083 = vmatpush3.bf16.xpose.msra.mxu0 %v567_v30  ;;  %1117 = vmatpush3.bf16.xpose.msra.mxu1 %v567_v30 }
  0xda   : > { %1132 = vmatprep.subr.msk.bf16.mxu0 %vm526_vm0, %v1271_v31  ;;  %1133 = vmatprep.subr.msk.bf16.mxu1 %vm526_vm0, %v1271_v31 }
  0xe1   : > { %1085 = vmatpush3.bf16.xpose.msra.mxu0 %v570_v34  ;;  %1118 = vmatpush3.bf16.xpose.msra.mxu1 %v570_v34 }
  0xe2   : > { %1134 = vmatprep.subr.msk.bf16.mxu0 %vm526_vm0, %v1272_v35  ;;  %1135 = vmatprep.subr.msk.bf16.mxu1 %vm526_vm0, %v1272_v35 }
  0xe9   : > { %1087 = vmatpush3.bf16.xpose.msra.mxu0 %v573_v36  ;;  %1119 = vmatpush3.bf16.xpose.msra.mxu1 %v573_v36 }
  0xf0   : > { %1089 = vmatmul.mubr.msk.bf16.vlgmr.msra.gmra.mrb[0].mxu0 %vm526_vm0, %v1275_v37  ;;  %1097 = vmatmul.mubr.msk.bf16.vlgmr.msra.gmra.mrb[0].mxu1 %vm526_vm0, %v1276_v38 }
  0xf1   : > { %1092 = vmatprep.mubr.msk.bf16.mxu0 %vm526_vm0, %v1277_v39  ;;  %1100 = vmatprep.mubr.msk.bf16.mxu1 %vm526_vm0, %v1278_v40 }
  0xf8   : > { %1093 = vmatmul.mubr.msk.bf16.gmra.mrb[4].mxu0 %vm526_vm0, %v1279_v41  ;;  %1101 = vmatmul.mubr.msk.bf16.gmra.mrb[4].mxu1 %vm526_vm0, %v1280_v42 }
 0x134   : > { %v379_v43 = vpop.permute.xlu1 %378  ;;  %v369_v44 = vpop.permute.xlu0 %368 }
 0x13a   : > { %v384_v45 = vpop.permute.xlu1 %383  ;;  %v374_v46 = vpop.permute.xlu0 %373 }
 0x13e   : > { %v1977_v47 = vpop.permute.xlu1 %393  ;;  %v389_v48 = vpop.permute.xlu0 %388 }
 0x142   : > { %v1979_v49 = vpop.permute.xlu1 %403  ;;  %v399_v50 = vpop.permute.xlu0 %398 }
 0x146   : > { %v1984_v55 = vpop.permute.xlu1 %413  ;;  %v409_v56 = vpop.permute.xlu0 %408 }
 0x14a   : > { %v424_v59 = vpop.permute.xlu1 %423  ;;  %v419_v60 = vpop.permute.xlu0 %418 }
 0x14e   : > { %v429_v14 = vpop.permute.xlu0 %428  ;;  %v434_v19 = vpop.permute.xlu1 %433 }
 0x152   : > { %v439_v40 = vpop.permute.xlu0 %438  ;;  %v444_v58 = vpop.permute.xlu1 %443 }
 0x1c3   : > { %v1090_v63 = vpop.f32.mrb[0].mxu0  ;;  %v1098_v0 = vpop.f32.mrb[0].mxu1 }
 0x1c4   : > { %v609_v2 = vpop.f32.mrb[1].mxu0  ;;  %v641_v3 = vpop.f32.mrb[1].mxu1  ;;  %v1999_v10 = vadd.f32 %v1090_v63, %v379_v43  ;;  %v2024_v35 = vadd.f32 %v1098_v0, %v419_v60 }
 0x1c5   : > { %v1993_v4 = vadd.f32 %v609_v2, %v369_v44  ;;  %v1091_v5 = vpop.f32.mrb[2].mxu0  ;;  %v1099_v6 = vpop.f32.mrb[2].mxu1  ;;  %v2029_v41 = vadd.f32 %v641_v3, %v409_v56 }
 0x1c6   : > { %v612_v8 = vpop.f32.mrb[3].mxu0  ;;  %v644_v9 = vpop.f32.mrb[3].mxu1  ;;  %v2007_v16 = vadd.f32 %v1091_v5, %v384_v45  ;;  %v822_v22 = vsel %vm806_vm3, %v1999_v10, 0.0  ;;  %v2045_v51 = vadd.f32 %v1099_v6, %v424_v59  ;;  %v793_v5 = vadd.s32 80, %v1982_v52 }
 0x1c7   : > { %v2001_v11 = vadd.f32 %v612_v8, %v374_v46  ;;  %v820_v15 = vsel %vm804_vm1, %v1993_v4, 0.0 }
 0x1c8   : > { %v823_v31 = vsel %vm807_vm4, %v2007_v16, 0.0  ;;  %vm814_vm11 = vcmp.eq.s32.totalorder %v793_v5, %v1989_v61 }
 0x1c9   : > { %v821_v17 = vsel %vm805_vm2, %v2001_v11, 0.0 }
 0x1ca   : > { %v836_v20 = vadd.f32 %v821_v17, %v820_v15  ;;  %v828_v15 = vsel %vm812_vm9, %v2029_v41, 0.0 }
 0x1cb   : > { %v1094_v24 = vpop.f32.mrb[4].mxu0  ;;  %v1102_v25 = vpop.f32.mrb[4].mxu1 }
 0x1cc   : > { %v837_v26 = vadd.f32 %v836_v20, %v822_v22  ;;  %v2016_v28 = vadd.f32 %v1094_v24, %v399_v50  ;;  %v625_v29 = vpop.f32.mrb[5].mxu0  ;;  %v657_v30 = vpop.f32.mrb[5].mxu1  ;;  %v2039_v45 = vadd.f32 %v1102_v25, %v439_v40  ;;  %v796_v22 = vadd.s32 104, %v1982_v52 }
 0x1cd   : > { %v2021_v32 = vadd.f32 %v625_v29, %v389_v48  ;;  %v1095_v33 = vpop.f32.mrb[6].mxu0  ;;  %v1103_v34 = vpop.f32.mrb[6].mxu1  ;;  %v2047_v53 = vadd.f32 %v657_v30, %v429_v14  ;;  %v830_v24 = vsel %vm814_vm11, %v2024_v35, 0.0  ;;  %v831_v29 = vsel %vm815_vm12, %v2045_v51, 0.0 }
 0x1ce   : > { %v675_v36 = vmax.f32 %v1999_v10, %v2016_v28  ;;  %v838_v37 = vadd.f32 %v837_v26, %v823_v31  ;;  %v628_v38 = vpop.f32.mrb[7].mxu0  ;;  %v660_v39 = vpop.f32.mrb[7].mxu1  ;;  %v2037_v44 = vadd.f32 %v1095_v33, %v1979_v49  ;;  %v2053_v49 = vadd.f32 %v644_v9, %v1984_v55 }
 0x1cf   : > { %v673_v42 = vmax.f32 %v1993_v4, %v2021_v32  ;;  %v824_v43 = vsel %vm808_vm5, %v2021_v32, 0.0  ;;  %v2043_v50 = vadd.f32 %v628_v38, %v1977_v47  ;;  %v2062_v63 = vadd.f32 %v1103_v34, %v444_v58 }
 0x1d0   : > { %v679_v46 = vmax.f32 %v675_v36, %v2024_v35  ;;  %v839_v48 = vadd.f32 %v838_v37, %v824_v43  ;;  %v676_v56 = vmax.f32 %v2007_v16, %v2037_v44  ;;  %v826_v55 = vsel %vm810_vm6, %v2016_v28, 0.0 }
 0x1d1   : > { %v677_v54 = vmax.f32 %v673_v42, %v2029_v41  ;;  %v674_v62 = vmax.f32 %v2001_v11, %v2043_v50  ;;  %v825_v47 = vsel %vm809_vm8, %v2043_v50, 0.0  ;;  %v2068_v2 = vadd.f32 %v660_v39, %v434_v19 }
 0x1d2   : > { %v683_v60 = vmax.f32 %v679_v46, %v2039_v45  ;;  %v680_v0 = vmax.f32 %v676_v56, %v2045_v51  ;;  %v840_v1 = vadd.f32 %v839_v48, %v825_v47  ;;  %v827_v8 = vsel %vm811_vm7, %v2037_v44, 0.0  ;;  %v2097_v46 = vld [vmem:[#allocation2] sm:$0x1] }
 0x1d3   : > { %v681_v59 = vmax.f32 %v677_v54, %v2047_v53  ;;  %v678_v3 = vmax.f32 %v674_v62, %v2053_v49  ;;  %v795_v19 = vadd.s32 96, %v1982_v52  ;;  %v829_v21 = vsel %vm813_vm10, %v2053_v49, 0.0 }
 0x1d4   : > { %v684_v6 = vmax.f32 %v680_v0, %v2062_v63  ;;  %v841_v7 = vadd.f32 %v840_v1, %v826_v55  ;;  %v797_v26 = vadd.s32 112, %v1982_v52  ;;  %v798_v31 = vadd.s32 120, %v1982_v52 }
 0x1d5   : > { %v682_v9 = vmax.f32 %v678_v3, %v2068_v2  ;;  %vm816_vm13 = vcmp.eq.s32.totalorder %v795_v19, %v1989_v61  ;;  %vm817_vm14 = vcmp.eq.s32.totalorder %v796_v22, %v1989_v61 }
 0x1d6   : > { %v686_v13 = vmax.f32 %v683_v60, %v684_v6  ;;  %v842_v14 = vadd.f32 %v841_v7, %v827_v8  ;;  %v832_v34 = vsel %vm816_vm13, %v2047_v53, 0.0  ;;  %vm818_vm15 = vcmp.eq.s32.totalorder %v797_v26, %v1989_v61 }
 0x1d7   : > { %v685_v17 = vmax.f32 %v681_v59, %v682_v9  ;;  %v833_v39 = vsel %vm817_vm14, %v2068_v2, 0.0  ;;  %vm819_vm0 = vcmp.eq.s32.totalorder %v798_v31, %v1989_v61  ;;  %v834_v42 = vsel %vm818_vm15, %v2039_v45, 0.0 }
 0x1d8   : > { %v843_v20 = vadd.f32 %v842_v14, %v828_v15  ;;  %v835_v54 = vsel %vm819_vm0, %v2062_v63, 0.0 }
 0x1d9   : > { %v687_v18 = vmax.f32 %v685_v17, %v686_v13 }
 0x1da   : > { %v844_v23 = vadd.f32 %v843_v20, %v829_v21 }
 0x1db   : > { %v688_v25 = vrot.slane %v687_v18, 4 }
 0x1dc   : > { %v845_v27 = vadd.f32 %v844_v23, %v830_v24 }
 0x1dd   : > { %v689_v30 = vmax.f32 %v687_v18, %v688_v25 }
 0x1de   : > { %v846_v33 = vadd.f32 %v845_v27, %v831_v29 }
 0x1df   : > { %v690_v36 = vrot.slane %v689_v30, 2 }
 0x1e0   : > { %v847_v37 = vadd.f32 %v846_v33, %v832_v34 }
 0x1e1   : > { %v691_v38 = vmax.f32 %v689_v30, %v690_v36 }
 0x1e2   : > { %v848_v40 = vadd.f32 %v847_v37, %v833_v39 }
 0x1e3   : > { %v692_v43 = vrot.slane %v691_v38, 1 }
 0x1e4   : > { %v849_v48 = vadd.f32 %v848_v40, %v834_v42 }
 0x1e5   : > { %v693_v56 = vmax.f32 %v691_v38, %v692_v43 }
 0x1e6   : > { %v850_v58 = vadd.f32 %v849_v48, %v835_v54 }
 0x1e7   : > { %v2101_v60 = vmax.f32 %v2097_v46, %v693_v56 }
 0x1e8   : > { %v851_v0 = vrot.slane %v850_v58, 4 }
 0x1e9   : > { %v2106_v62 = vrot.slane %v2101_v60, %v703_v57  ;;  %777 = vst [vmem:[#allocation2] sm:$0x1] %v2101_v60 }
 0x1ea   : > { %v852_v6 = vadd.f32 %v851_v0, %v850_v58 }
 0x1eb   : > { %v706_v61 = vsub.f32 %v1993_v4, %v2106_v62  ;;  %v707_v47 = vsub.f32 %v2001_v11, %v2106_v62  ;;  %v708_v59 = vsub.f32 %v1999_v10, %v2106_v62  ;;  %v709_v1 = vsub.f32 %v2007_v16, %v2106_v62 }
 0x1ec   : > { %v710_v52 = vsub.f32 %v2021_v32, %v2106_v62  ;;  %v711_v57 = vsub.f32 %v2043_v50, %v2106_v62  ;;  %v712_v55 = vsub.f32 %v2016_v28, %v2106_v62  ;;  %v713_v4 = vsub.f32 %v2037_v44, %v2106_v62 }
 0x1ed   : > { %v714_v11 = vsub.f32 %v2029_v41, %v2106_v62  ;;  %v715_v10 = vsub.f32 %v2053_v49, %v2106_v62  ;;  %v716_v16 = vsub.f32 %v2024_v35, %v2106_v62  ;;  %v717_v32 = vsub.f32 %v2045_v51, %v2106_v62 }
 0x1ee   : > { %v718_v50 = vsub.f32 %v2047_v53, %v2106_v62  ;;  %v719_v28 = vsub.f32 %v2068_v2, %v2106_v62  ;;  %v720_v44 = vsub.f32 %v2039_v45, %v2106_v62  ;;  %v721_v41 = vsub.f32 %v2062_v63, %v2106_v62  ;;  %v799_v45 = vld [vmem:[#allocation4] sm:$0x1] }
 0x1ef   : > { %v722_v3 = vmul.f32 1.442695, %v706_v61  ;;  %v724_v49 = vmul.f32 1.442695, %v707_v47  ;;  %v726_v5 = vmul.f32 1.442695, %v708_v59  ;;  %v695_v61 = vsub.f32 %v2097_v46, %v2101_v60 }
 0x1f0   : > { %v728_v35 = vmul.f32 1.442695, %v709_v1  ;;  %v730_v51 = vmul.f32 1.442695, %v710_v52  ;;  %v853_v7 = vrot.slane %v852_v6, 2 }
 0x1f1   : > { %1281 = vpow2.f32 %v722_v3  ;;  %v732_v53 = vmul.f32 1.442695, %v711_v57  ;;  %v734_v2 = vmul.f32 1.442695, %v712_v55  ;;  %v736_v12 = vmul.f32 1.442695, %v713_v4 }
 0x1f2   : > { %1283 = vpow2.f32 %v724_v49  ;;  %v854_v8 = vadd.f32 %v853_v7, %v852_v6  ;;  %v738_v15 = vmul.f32 1.442695, %v714_v11  ;;  %v740_v21 = vmul.f32 1.442695, %v715_v10 }
 0x1f3   : > { %1285 = vpow2.f32 %v726_v5  ;;  %v742_v23 = vmul.f32 1.442695, %v716_v16  ;;  %v744_v26 = vmul.f32 1.442695, %v717_v32  ;;  %v746_v30 = vmul.f32 1.442695, %v718_v50 }
 0x1f4   : > { %1287 = vpow2.f32 %v728_v35  ;;  %v855_v9 = vrot.slane %v854_v8, 1  ;;  %v748_v34 = vmul.f32 1.442695, %v719_v28  ;;  %v750_v38 = vmul.f32 1.442695, %v720_v44 }
 0x1f5   : > { %1289 = vpow2.f32 %v730_v51  ;;  %v752_v42 = vmul.f32 1.442695, %v721_v41  ;;  %v696_v52 = vmul.f32 1.442695, %v695_v61  ;;  %v698_v41 = vld [vmem:[#allocation3] sm:$0x1] }
 0x1f6   : > { %1291 = vpow2.f32 %v732_v53  ;;  %v856_v63 = vadd.f32 %v855_v9, %v854_v8  ;;  %v864_v35 = vld [vmem:[#allocation2] sm:$0x1] (!%p1049_p13) }
 0x1f7   : > { %1293 = vpow2.f32 %v734_v2 }
 0x1f8   : > { %v857_v17 = vadd.f32 %v856_v63, %v799_v45  ;;  %1295 = vpow2.f32 %v736_v12 }
 0x1f9   : > { %1297 = vpow2.f32 %v738_v15 }
 0x1fa   : > { %858 = vst [vmem:[#allocation4] sm:$0x1] %v857_v17  ;;  %1299 = vpow2.f32 %v740_v21 }
 0x1fb   : > { %v1282_v13 = vpop.eup %1281  ;;  %1301 = vpow2.f32 %v742_v23 }
 0x1fc   : > { %v1284_v14 = vpop.eup %1283  ;;  %1303 = vpow2.f32 %v744_v26 }
 0x1fd   : > { %v754_v19 = vadd.f32 %v1284_v14, %v1282_v13  ;;  %v1286_v20 = vpop.eup %1285  ;;  %1305 = vpow2.f32 %v746_v30 }
 0x1fe   : > { %v1288_v22 = vpop.eup %1287  ;;  %1307 = vpow2.f32 %v748_v34 }
 0x1ff   : > { %v755_v18 = vadd.f32 %v1286_v20, %v754_v19  ;;  %v1290_v25 = vpop.eup %1289  ;;  %1309 = vpow2.f32 %v750_v38 }
 0x200   : > { %v1292_v29 = vpop.eup %1291  ;;  %1311 = vpow2.f32 %v752_v42 }
 0x201   : > { %v756_v24 = vadd.f32 %v1288_v22, %v755_v18  ;;  %v1294_v33 = vpop.eup %1293  ;;  %1313 = vpow2.f32 %v696_v52  ;;  %v863_v7 = vld [vmem:[#allocation4] sm:$0x1] (!%p1049_p13) }
 0x202   : > { %v1296_v37 = vpop.eup %1295 }
 0x203   : > { %v757_v27 = vadd.f32 %v1290_v25, %v756_v24  ;;  %v1298_v40 = vpop.eup %1297 }
 0x204   : > { %v1300_v48 = vpop.eup %1299 }
 0x205   : > { %v758_v31 = vadd.f32 %v1292_v29, %v757_v27  ;;  %v1302_v56 = vpop.eup %1301 }
 0x206   : > { %v1304_v62 = vpop.eup %1303 }
 0x207   : > { %v759_v36 = vadd.f32 %v1294_v33, %v758_v31  ;;  %v1306_v59 = vpop.eup %1305 }
 0x208   : > { %v1308_v1 = vpop.eup %1307 }
 0x209   : > { %v760_v39 = vadd.f32 %v1296_v37, %v759_v36  ;;  %v1310_v55 = vpop.eup %1309 }
 0x20a   : > { %v1312_v11 = vpop.eup %1311 }
 0x20b   : > { %v761_v43 = vadd.f32 %v1298_v40, %v760_v39  ;;  %v1314_v44 = vpop.eup %1313 }
 0x20c   : > { %v699_v49 = vmul.f32 %v1314_v44, %v698_v41 }
 0x20d   : > { %v762_v54 = vadd.f32 %v1300_v48, %v761_v43 }
 0x20f   : > { %v763_v58 = vadd.f32 %v1302_v56, %v762_v54 }
 0x211   : > { %v764_v47 = vadd.f32 %v1304_v62, %v763_v58 }
 0x213   : > { %v765_v0 = vadd.f32 %v1306_v59, %v764_v47 }
 0x215   : > { %v766_v57 = vadd.f32 %v1308_v1, %v765_v0 }
 0x217   : > { %v767_v4 = vadd.f32 %v1310_v55, %v766_v57 }
 0x219   : > { %v768_v10 = vadd.f32 %v1312_v11, %v767_v4 }
 0x21b   : > { %v769_v16 = vrot.slane %v768_v10, 4 }
 0x21d   : > { %v770_v32 = vadd.f32 %v769_v16, %v768_v10 }
 0x21f   : > { %v771_v50 = vrot.slane %v770_v32, 2 }
 0x221   : > { %v772_v28 = vadd.f32 %v771_v50, %v770_v32 }
 0x223   : > { %v773_v3 = vrot.slane %v772_v28, 1  ;;  %862 = sbr.rel (%p1049_p13) target bundleno = 579 (0x243), region = 60 }
 0x225   : > { %v774_v46 = vadd.f32 %v773_v3, %v772_v28 }
 0x227   : > { %v775_v60 = vadd.f32 %v774_v46, %v699_v49 }
 0x229   : > { %776 = vst [vmem:[#allocation3] sm:$0x1] %v775_v60 }
 0x230   : > { %v865_v5 = vld [vmem:[#allocation3] sm:$0x1] }
 0x231   : > { %1315 = vlog2.f32 %v865_v5 }
 0x23b   : > { %v1316_v6 = vpop.eup %1315 }
 0x23c   : > { %v867_v51 = vmul.f32 0.6931472, %v1316_v6 }
 0x23e   : > { %v868_v53 = vadd.f32 %v867_v51, %v864_v35 }
 0x240   : > { %v869_v8 = vsub.f32 %v863_v7, %v868_v53 }
 0x242   : > { %870 = vst [vmem:[%s1918_s8] sm:$0x1] %v869_v8 }
 0x243 PF: > { %s2261_s14 = sshll.u32 %s1555_s22, 4  ;;  %s884_s26 = sshll.u32 %s1918_s8, 4  ;;  %s885_s26 = int_to_ptr.vmem [resolvable:$true] %s884_s26 }
 0x244   : > { %s2150_s21 = scalar_lea.hbm %s2213_s4, %s2261_s14  ;;  %s872_s7 = scalar_lea.sflag [#allocation7], %s305_s28 }
 0x245   : > { %s1437_s24 = scalar_lea.vmem %s885_s26, 16  ;;  %p2262_p8 = scmp.ne.s32.totalorder %s2247_s29, 0 }
 0x246   : > { %p1438_p9 = scmp.ne.s32.totalorder %s885_s26, %s1437_s24  ;;  %s1580_s30 = smov [#allocation13]  }
 0x247   : > { %s1441_s17 = sshll.u32 %s1580_s30, 4  ;;  %s1442_s17 = int_to_ptr.vmem [resolvable:$false] %s1441_s17 }
 0x248   : > { %p1439_p7 = pnand %p1438_p9, %p2262_p8  ;;  %s1443_s22 = scalar_lea.vmem %s1442_s17, 32 }
 0x249   : > { %p1444_p4 = scmp.lt.s32.totalorder %s885_s26, %s1442_s17  ;;  %p1445_p1 = scmp.lt.s32.totalorder %s1443_s22, %s1437_s24 }
 0x24a   : > { %p1440_p11 = pneg %p1439_p7 }
 0x24b   : > { %p1446_p6 = por %p1445_p1, %p1444_p4 }
 0x24d   : > { %p1447_p12 = pnand %p1446_p6, %p1440_p11 }
 0x24f   : > { %1450 = shalt.err (!%p1447_p12)
}
 0x250   : > { %s1451_s18 = scalar_lea.hbm %s2150_s21, 16  ;;  %s1455_s11 = scalar_lea.hbm %s2213_s4, 32 }
 0x251   : > { %p1452_p3 = scmp.ne.s32.totalorder %s2150_s21, %s1451_s18  ;;  %p1456_p0 = scmp.lt.u32.totalorder %s2150_s21, %s2213_s4 }
 0x252   : > { %p1457_p10 = scmp.lt.u32.totalorder %s1455_s11, %s1451_s18  ;;  %p1459_p9 = scmp.lt.u32.totalorder %s1451_s18, %s2150_s21 }
 0x253   : > { %p1453_p2 = pnand %p1452_p3, %p2262_p8 }
 0x254   : > { %p1458_p13 = por %p1457_p10, %p1456_p0 }
 0x255   : > { %p1454_p5 = pneg %p1453_p2 }
 0x256   : > { %p1460_p7 = por %p1459_p9, %p1458_p13 }
 0x258   : > { %p1461_p11 = pnand %p1460_p7, %p1454_p5 }
 0x25a   : > { %1464 = shalt.err (!%p1461_p11)
}
 0x25b   : > { %1144 = dma.vmem_to_hbm [thread:$0]  (%p2262_p8), %s885_s26, 16, %s2150_s21, %s872_s7  }
 0x25c PF: > { %s2263_s20 = sld [smem:[#allocation19_spill]]  ;;  %s2264_s6 = sld [smem:[#allocation26_spill]] }
 0x25d   : > { %p1165_p4 = scmp.ge.s32.totalorder %s1567_s25, 2 }
 0x262   : > { %s896_s12 = sand.u32 1, %s2263_s20   ;;  %p2265_p1 = scmp.ne.s32.totalorder %s2264_s6, 0 }
 0x263   : > { %s897_s28 = scalar_lea.sflag [#allocation7], %s896_s12 }
 0x264   : > { %p1161_p6 = pnand %p1165_p4, %p2265_p1 }
 0x266   : > { %1522 = dma.done.wait (!%p1161_p6), %s897_s28, 16  }
 0x267   : > { %1524 = vsyncadd (!%p1161_p6), %s897_s28, 4294967280  ;;  %s22_s25 = sadd.s32 1, %s1567_s25   ;;  %s2266_s8 = sld [smem:[#allocation18_spill]] }
 0x268   : > { %p19_p12 = scmp.ge.s32.totalorder %s22_s25, 6   ;;  %s2267_s17 = sld [smem:[#allocation24_spill]] }
 0x269   : > { %s2268_s29 = sld [smem:[#allocation20_spill]]  ;;  %s2269_s20 = sld [smem:[#allocation25_spill]] }
 0x26a   : > { %s2270_s22 = sld [smem:[#allocation21_spill]]  ;;  %s2271_s27 = sld [smem:[#allocation22_spill]] }
 0x26b   : > { %s2272_s24 = sld [smem:[#allocation23_spill]]  ;;  %s2273_s15 = smov %s1531_s16 }
 0x26c   : > { %s2275_s18 = smov %s1543_s19  ;;  %s2277_s21 = smov %s1559_s23 }
 0x26d   : > { %s2274_s16 = smov %s2266_s8  ;;  %21 = sbr.rel (!%p19_p12) target bundleno = 13 (0xd), region = 111 }
 0x26f   : > { %s2276_s19 = smov %s2268_s29 }
 0x270   : > { %s2278_s23 = smov %s2271_s27 }
 0x274   :  { %901 = vsyncpa [#allocation6], 1 }
 0x275   :  { %903 = vsyncpa [#allocation6 + $0x1], 1 }
 0x276   :  { %904 = vsyncpa [#allocation9], 1 }
 0x277   :  { %906 = vsyncpa [#allocation9 + $0x1], 1 }
 0x278   :  { %907 = vsyncpa [#allocation12], 1 }
 0x279   :  { %908 = vsyncpa [#allocation7], 1 }
 0x27a   :  { %910 = vsyncpa [#allocation7 + $0x1], 1 }

// kernel: tpu_custom_call.1
= control target key start
LH: loop header
LB: loop body
LE: loop exit
PB: predicated region body
PF: predicated region fallthrough
CT: control target
= control target key end

     0   :  { %s2273_s0 = inlined_call_operand.hbm [shape: bf16[256,32], index: 0, kind: input, shape index: {}]   ;;  %s2274_s1 = inlined_call_operand.hbm [shape: bf16[256,32], index: 1, kind: input, shape index: {}]   ;;  %s2275_s2 = inlined_call_operand.hbm [shape: f32[256,1], index: 2, kind: input, shape index: {}]   ;;  %s2276_s3 = inlined_call_operand.hbm [shape: s32[1,256], index: 3, kind: input, shape index: {}]   ;;  %s2277_s4 = inlined_call_operand.hbm [shape: f32[1,256], index: 4, kind: output, shape index: {}]  }
   0x1   :  { %2296 = sst [smem:[#allocation28_spill]] %s2274_s1 }
   0x2   :  { %2297 = sst [smem:[#allocation29_spill]] %s2277_s4 }
   0x3   :  { %9 = vsyncpa [#allocation6], 0 }
   0x4   :  { %11 = vsyncpa [#allocation6 + $0x1], 0 }
   0x5   :  { %12 = vsyncpa [#allocation9], 0 }
   0x6   :  { %14 = vsyncpa [#allocation9 + $0x1], 0 }
   0x7   :  { %15 = vsyncpa [#allocation12], 0 }
   0x8   :  { %17 = vsyncpa [#allocation12 + $0x1], 0 }
   0x9   :  { %18 = vsyncpa [#allocation7], 0 }
   0xa   :  { %20 = vsyncpa [#allocation7 + $0x1], 0  ;;  %s1653_s15 = smov 0   ;;  %s1655_s16 = smov 0  }
   0xb   :  { %s1657_s17 = smov 0   ;;  %s1659_s18 = smov 0  }
   0xc   :  { %s1661_s19 = smov 0   ;;  %s1663_s20 = smov 0  }
   0xd   :  { %s1665_s21 = smov 0   ;;  %s1667_s22 = smov 0  }
   0xe   :  { %s1669_s23 = smov 0   ;;  %s1671_s24 = smov 0  }
   0xf   :  { %s1673_s25 = smov 0  }
  0x10 LB: > { %2298 = sst [smem:[#allocation18_spill]] %s1582_s17  ;;  %s1707_s26 = sadd.s32 4294967295, %s1614_s25   ;;  %s1614_s25 = sphi %s1673_s25, %s26_s25   ;;  %s1610_s24 = sphi %s1671_s24, %s2349_s24   ;;  %s1606_s23 = sphi %s1669_s23, %s2342_s23   ;;  %s1602_s22 = sphi %s1667_s22, %s2348_s22   ;;  %s1598_s21 = sphi %s1665_s21, %s2341_s21   ;;  %s1594_s20 = sphi %s1663_s20, %s2340_s20   ;;  %s1590_s19 = sphi %s1661_s19, %s2347_s19   ;;  %s1586_s18 = sphi %s1659_s18, %s2346_s18   ;;  %s1582_s17 = sphi %s1657_s17, %s2338_s17   ;;  %s1578_s16 = sphi %s1655_s16, %s2345_s16   ;;  %s1574_s15 = sphi %s1653_s15, %s2344_s15  }
  0x11   : > { %2299 = sst [smem:[#allocation19_spill]] %s1586_s18  ;;  %s35_s27 = sadd.s32 1, %s1606_s23 }
  0x12   : > { %2300 = sst [smem:[#allocation20_spill]] %s1594_s20  ;;  %p1710_p0 = scmp.ge.s32.totalorder %s35_s27, 2 }
  0x13   : > { %2301 = sst [smem:[#allocation21_spill]] %s1602_s22  ;;  %p2281_p1 = scmp.eq.s32.totalorder %s1614_s25, 0 }
  0x14   : > { %2302 = sst [smem:[#allocation22_spill]] %s1606_s23  ;;  %p2280_p2 = scmp.eq.s32.totalorder %s1707_s26, 0 }
  0x15   : > { %s71_s29 = sadd.s32 1, %s1582_s17  ;;  %s2351_s27 = smov (%p1710_p0, %s35_s27), 0 }
  0x16   : > { %2304 = sst [smem:[#allocation23_spill]] %s2351_s27  ;;  %p78_p3 = scmp.ne.s32.totalorder %s1582_s17, %s1578_s16 }
  0x17   : > { %p84_p4 = scmp.ne.s32.totalorder %s1578_s16, %s1574_s15  ;;  %s68_s30 = ssub.s32 %s1606_s23, %s2351_s27 }
  0x18   : > { %p69_p5 = scmp.eq.s32.totalorder %s68_s30, 0  ;;  %p80_p6 = por %p78_p3, %p2281_p1 }
  0x19   : > { %p1730_p7 = por %p84_p4, %p2280_p2  ;;  %p2279_p8 = scmp.lt.s32.totalorder %s1614_s25, 4 }
  0x1a   : > { %s1736_s6 = scalar_select %p69_p5, %s1582_s17, %s71_s29  }
  0x1b   : > { %s2305_s5 = scalar_select %p1730_p7, 1, 0 }
  0x1c   : > { %2306 = sst [smem:[#allocation24_spill]] %s1736_s6  ;;  %s207_s7 = sand.u32 1, %s1614_s25  }
  0x1d   : > { %s209_s8 = sand.u32 1, %s1582_s17   ;;  %s1104_s10 = sshll.u32 %s1606_s23, 10 }
  0x1e   : > { %s1062_s9 = sshll.u32 %s209_s8, 6  ;;  %s2307_s1 = sld [smem:[#allocation28_spill]] }
  0x1f   : > { %s211_s14 = scalar_lea.vmem [#allocation8], %s1062_s9  ;;  %p1750_p9 = pnand %p2279_p8, %p80_p6 }
  0x20   : > { %s218_s15 = sshll.u32 %s211_s14, 4  ;;  %s1754_s30 = sshll.u32 %s209_s8, 7  ;;  %s1746_s15 = int_to_ptr.vmem [resolvable:$true] %s218_s15 }
  0x21   : > { %p2292_p12 = pneg %p1750_p9 }
  0x24   : > { %s1744_s13 = scalar_lea.hbm %s2307_s1, %s1104_s10  ;;  %s1757_s10 = scalar_lea.sflag [#allocation9], %s207_s7 }
  0x25   : > { %s1364_s11 = scalar_lea.hbm %s1744_s13, 1024  ;;  %s1369_s14 = scalar_lea.hbm %s2307_s1, 2048 }
  0x26   : > { %p1365_p11 = scmp.ne.s32.totalorder %s1744_s13, %s1364_s11  ;;  %p1370_p4 = scmp.lt.u32.totalorder %s1744_s13, %s2307_s1 }
  0x27   : > { %p1371_p5 = scmp.lt.u32.totalorder %s1369_s14, %s1364_s11  ;;  %p1373_p8 = scmp.lt.u32.totalorder %s1364_s11, %s1744_s13 }
  0x28   : > { %p1367_p13 = pnand %p2292_p12, %p1365_p11 }
  0x29   : > { %p1372_p6 = por %p1371_p5, %p1370_p4 }
  0x2a   : > { %p1368_p3 = pneg %p1367_p13 }
  0x2b   : > { %p1374_p2 = por %p1373_p8, %p1372_p6 }
  0x2d   : > { %p1375_p1 = pnand %p1374_p2, %p1368_p3 }
  0x2f   : > { %1378 = shalt.err (!%p1375_p1)
}
  0x30   : > { %s1379_s7 = scalar_lea.vmem %s1746_s15, 1024  ;;  %s1616_s8 = smov [#allocation8]  }
  0x31   : > { %p1380_p11 = scmp.ne.s32.totalorder %s1746_s15, %s1379_s7  ;;  %s1384_s9 = sshll.u32 %s1616_s8, 4  ;;  %s1385_s9 = int_to_ptr.vmem [resolvable:$false] %s1384_s9 }
  0x32   : > { %s1386_s27 = scalar_lea.vmem %s1385_s9, 2048  ;;  %p1387_p7 = scmp.lt.s32.totalorder %s1746_s15, %s1385_s9 }
  0x33   : > { %p1382_p13 = pnand %p1380_p11, %p2292_p12  ;;  %p1388_p4 = scmp.lt.s32.totalorder %s1386_s27, %s1379_s7 }
  0x35   : > { %p1383_p10 = pneg %p1382_p13  ;;  %p1389_p5 = por %p1388_p4, %p1387_p7 }
  0x37   : > { %p1390_p8 = pnand %p1389_p5, %p1383_p10 }
  0x39   : > { %1393 = shalt.err (!%p1390_p8)
}
  0x3a   : > { %s2283_s6 = smov 64   ;;  %s2284_s11 = smov 4  }
  0x3b   : > { %1202 = dma.hbm_to_vmem [thread:$0]  (!%p1750_p9), %s1744_s13, 1024, %s1746_s15, %s1757_s10, %s2283_s6, %s2283_s6, %s2284_s11  }
  0x3c   : > { %s232_s12 = scalar_lea.vmem [#allocation10], %s1754_s30  ;;  %p264_p1 = scmp.lt.s32.totalorder %s1614_s25, 5 }
  0x3d   : > { %s239_s14 = sshll.u32 %s232_s12, 4  ;;  %p2309_p2 = scmp.ge.s32.totalorder %s1614_s25, 1  ;;  %s1855_s14 = int_to_ptr.vmem [resolvable:$true] %s239_s14 }
  0x3e   : > { %s1056_s8 = sadd.s32 4294967294, %s1614_s25   ;;  %s38_s9 = sadd.s32 1, %s1610_s24 }
  0x3f   : > { %p1792_p7 = pnand %p2309_p2, %p264_p1  ;;  %s45_s27 = sadd.s32 1, %s1594_s20 }
  0x40   : > { %s2353_s9 = smov (!%p1710_p0, %s38_s9), %s1610_s24  ;;  %p52_p10 = scmp.ne.s32.totalorder %s1594_s20, %s1590_s19 }
  0x41   : > { %s2310_s7 = scalar_select %p1792_p7, 1, 0 }
  0x42   : > { %p58_p3 = scmp.ne.s32.totalorder %s1590_s19, %s1586_s18  ;;  %p40_p6 = scmp.ge.s32.totalorder %s2353_s9, 2 }
  0x43   : > { %p160_p11 = scmp.eq.s32.totalorder %s1707_s26, 3  ;;  %p2311_p13 = scmp.eq.s32.totalorder %s1614_s25, 0 }
  0x44   : > { %p2313_p5 = scmp.eq.s32.totalorder %s1707_s26, 0  ;;  %s2355_s9 = smov (%p40_p6, %s2353_s9), 0 }
  0x45   : > { %p1809_p4 = por %p2311_p13, %p52_p10  ;;  %2315 = sst [smem:[#allocation25_spill]] %s2355_s9 }
  0x46   : > { %p1815_p8 = por %p2313_p5, %p58_p3  ;;  %p1821_p0 = por %p160_p11, %p52_p10 }
  0x47   : > { %p166_p1 = scmp.eq.s32.totalorder %s1056_s8, 3  ;;  %s42_s30 = ssub.s32 %s1610_s24, %s2355_s9 }
  0x48   : > { %s2314_s15 = scalar_select %p1815_p8, 1, 0 }
  0x49   : > { %s2316_s28 = scalar_select %p1821_p0, 1, 0 }
  0x4a   : > { %s1828_s12 = sand.u32 1, %s1594_s20   ;;  %p43_p2 = scmp.eq.s32.totalorder %s42_s30, 0 }
  0x4b   : > { %p1830_p13 = por %p166_p1, %p58_p3  ;;  %s1059_s11 = sshll.u32 %s1828_s12, 6 }
  0x4c   : > { %s1836_s1 = scalar_select %p43_p2, %s1594_s20, %s45_s27  }
  0x4d   : > { %s2317_s6 = scalar_select %p1830_p13, 1, 0 }
  0x4e   : > { %2319 = sst [smem:[#allocation27_spill]] %s1836_s1  ;;  %s1103_s17 = sshll.u32 %s1610_s24, 10 }
  0x4f   : > { %2318 = sst [smem:[#allocation26_spill]] %s2317_s6  ;;  %s1842_s22 = scalar_lea.hbm %s2273_s0, %s1103_s17 }
  0x50   : > { %s190_s8 = scalar_lea.vmem [#allocation5], %s1059_s11  ;;  %p2320_p10 = scmp.lt.s32.totalorder %s1614_s25, 4 }
  0x51   : > { %s197_s9 = sshll.u32 %s190_s8, 4  ;;  %s1105_s27 = sshll.u32 %s1606_s23, 11  ;;  %s1844_s9 = int_to_ptr.vmem [resolvable:$true] %s197_s9 }
  0x52   : > { %p1850_p3 = pnand %p2320_p10, %p1809_p4  ;;  %s1860_s18 = scalar_lea.hbm %s2275_s2, %s1105_s27 }
  0x53   : > { %s187_s11 = scalar_lea.sflag [#allocation6], %s1828_s12  ;;  %s1394_s8 = scalar_lea.hbm %s1842_s22, 1024 }
  0x54   : > { %p1395_p6 = scmp.ne.s32.totalorder %s1842_s22, %s1394_s8  ;;  %p2295_p11 = pneg %p1850_p3 }
  0x55   : > { %s1399_s23 = scalar_lea.hbm %s2273_s0, 2048  ;;  %p1400_p1 = scmp.lt.u32.totalorder %s1842_s22, %s2273_s0 }
  0x56   : > { %p1397_p4 = pnand %p2295_p11, %p1395_p6  ;;  %p1401_p2 = scmp.lt.u32.totalorder %s1399_s23, %s1394_s8 }
  0x57   : > { %p1403_p12 = scmp.lt.u32.totalorder %s1394_s8, %s1842_s22 }
  0x58   : > { %p1398_p5 = pneg %p1397_p4  ;;  %p1402_p10 = por %p1401_p2, %p1400_p1 }
  0x5a   : > { %p1404_p13 = por %p1403_p12, %p1402_p10 }
  0x5c   : > { %p1405_p0 = pnand %p1404_p13, %p1398_p5 }
  0x5e   : > { %1408 = shalt.err (!%p1405_p0)
}
  0x5f   : > { %s1409_s27 = scalar_lea.vmem %s1844_s9, 1024  ;;  %s1619_s1 = smov [#allocation5]  }
  0x60   : > { %p1410_p6 = scmp.ne.s32.totalorder %s1844_s9, %s1409_s27  ;;  %s1414_s4 = sshll.u32 %s1619_s1, 4  ;;  %s1415_s4 = int_to_ptr.vmem [resolvable:$false] %s1414_s4 }
  0x61   : > { %s1416_s20 = scalar_lea.vmem %s1415_s4, 2048  ;;  %p1417_p7 = scmp.lt.s32.totalorder %s1844_s9, %s1415_s4 }
  0x62   : > { %p1412_p4 = pnand %p1410_p6, %p2295_p11  ;;  %p1418_p1 = scmp.lt.s32.totalorder %s1416_s20, %s1409_s27 }
  0x64   : > { %p1413_p8 = pneg %p1412_p4  ;;  %p1419_p2 = por %p1418_p1, %p1417_p7 }
  0x66   : > { %p1420_p12 = pnand %p1419_p2, %p1413_p8 }
  0x68   : > { %1423 = shalt.err (!%p1420_p12)
}
  0x69   : > { %s2322_s23 = smov 4   ;;  %s2323_s6 = smov 64  }
  0x6a   : > { %1199 = dma.hbm_to_vmem [thread:$0]  (!%p1850_p3), %s1842_s22, 1024, %s1844_s9, %s187_s11, %s2323_s6, %s2323_s6, %s2322_s23  }
  0x6b   : > { %s1424_s17 = scalar_lea.hbm %s1860_s18, 2048  ;;  %p2324_p7 = pneg %p1750_p9 }
  0x6c   : > { %p1425_p0 = scmp.ne.s32.totalorder %s1860_s18, %s1424_s17  ;;  %s1429_s27 = scalar_lea.hbm %s2275_s2, 4096 }
  0x6d   : > { %p1430_p5 = scmp.lt.u32.totalorder %s1860_s18, %s2275_s2  ;;  %p1431_p10 = scmp.lt.u32.totalorder %s1429_s27, %s1424_s17 }
  0x6e   : > { %p1427_p8 = pnand %p1425_p0, %p2324_p7  ;;  %p1433_p4 = scmp.lt.u32.totalorder %s1424_s17, %s1860_s18 }
  0x6f   : > { %p1432_p6 = por %p1431_p10, %p1430_p5 }
  0x70   : > { %p1428_p13 = pneg %p1427_p8 }
  0x71   : > { %p1434_p1 = por %p1433_p4, %p1432_p6 }
  0x73   : > { %p1435_p2 = pnand %p1434_p1, %p1428_p13 }
  0x75   : > { %1438 = shalt.err (!%p1435_p2)
}
  0x76   : > { %s1439_s22 = scalar_lea.vmem %s1855_s14, 2048  ;;  %p2325_p0 = pmov %p2324_p7 }
  0x77   : > { %p1440_p12 = scmp.ne.s32.totalorder %s1855_s14, %s1439_s22  ;;  %s1620_s9 = smov [#allocation10]  }
  0x78   : > { %s1444_s11 = sshll.u32 %s1620_s9, 4  ;;  %s1445_s11 = int_to_ptr.vmem [resolvable:$false] %s1444_s11 }
  0x79   : > { %p1442_p7 = pnand %p1440_p12, %p2325_p0  ;;  %s1446_s20 = scalar_lea.vmem %s1445_s11, 4096 }
  0x7a   : > { %p1447_p11 = scmp.lt.s32.totalorder %s1855_s14, %s1445_s11  ;;  %p1448_p5 = scmp.lt.s32.totalorder %s1446_s20, %s1439_s22 }
  0x7b   : > { %p1443_p8 = pneg %p1442_p7 }
  0x7c   : > { %p1449_p10 = por %p1448_p5, %p1447_p11 }
  0x7e   : > { %p1450_p6 = pnand %p1449_p10, %p1443_p8 }
  0x80   : > { %1453 = shalt.err (!%p1450_p6)
}
  0x81   : > { %s1621_s23 = smov 128   ;;  %s1622_s6 = smov 8  }
  0x82   : > { %1205 = dma.hbm_to_vmem [thread:$0]  (!%p1750_p9), %s1860_s18, 2048, %s1855_s14, %s1757_s10, %s1621_s23, %s1621_s23, %s1622_s6  }
  0x83   : > { %s1068_s17 = sshll.u32 %s1610_s24, 4  ;;  %s252_s8 = scalar_lea.vmem [#allocation11], %s1828_s12 }
  0x84   : > { %s259_s13 = sshll.u32 %s252_s8, 4  ;;  %s1922_s4 = scalar_lea.hbm %s2276_s3, %s1068_s17  ;;  %s260_s13 = int_to_ptr.vmem [resolvable:$true] %s259_s13 }
  0x85   : > { %s250_s22 = scalar_lea.sflag [#allocation12], %s1828_s12  ;;  %s1454_s9 = scalar_lea.hbm %s1922_s4, 16 }
  0x86   : > { %p1455_p11 = scmp.ne.s32.totalorder %s1922_s4, %s1454_s9  ;;  %p2326_p13 = pneg %p1850_p3 }
  0x87   : > { %s1459_s14 = scalar_lea.hbm %s2276_s3, 32  ;;  %p1460_p1 = scmp.lt.u32.totalorder %s1922_s4, %s2276_s3 }
  0x88   : > { %p1457_p4 = pnand %p1455_p11, %p2326_p13  ;;  %p1461_p2 = scmp.lt.u32.totalorder %s1459_s14, %s1454_s9 }
  0x89   : > { %p1463_p0 = scmp.lt.u32.totalorder %s1454_s9, %s1922_s4 }
  0x8a   : > { %p1458_p9 = pneg %p1457_p4  ;;  %p1462_p12 = por %p1461_p2, %p1460_p1 }
  0x8c   : > { %p1464_p7 = por %p1463_p0, %p1462_p12 }
  0x8e   : > { %p1465_p8 = pnand %p1464_p7, %p1458_p9 }
  0x90   : > { %1468 = shalt.err (!%p1465_p8)
}
  0x91   : > { %s1469_s12 = scalar_lea.vmem %s260_s13, 16  ;;  %p2327_p10 = pmov %p2326_p13 }
  0x92   : > { %p1470_p5 = scmp.ne.s32.totalorder %s260_s13, %s1469_s12  ;;  %s1623_s20 = smov [#allocation11]  }
  0x93   : > { %s1474_s23 = sshll.u32 %s1623_s20, 4  ;;  %s1475_s23 = int_to_ptr.vmem [resolvable:$false] %s1474_s23 }
  0x94   : > { %p1472_p6 = pnand %p1470_p5, %p2327_p10  ;;  %s1476_s6 = scalar_lea.vmem %s1475_s23, 32 }
  0x95   : > { %p1477_p13 = scmp.lt.s32.totalorder %s260_s13, %s1475_s23  ;;  %p1478_p4 = scmp.lt.s32.totalorder %s1476_s6, %s1469_s12 }
  0x96   : > { %p1473_p11 = pneg %p1472_p6 }
  0x97   : > { %p1479_p1 = por %p1478_p4, %p1477_p13 }
  0x99   : > { %p1480_p2 = pnand %p1479_p1, %p1473_p11 }
  0x9b   : > { %1483 = shalt.err (!%p1480_p2)
}
  0x9c   : > { %1208 = dma.hbm_to_vmem [thread:$0]  (!%p1850_p3), %s1922_s4, 16, %s260_s13, %s250_s22  }
  0x9d   : > { %p2328_p9 = scmp.ne.s32.totalorder %s2310_s7, 0 }
  0x9e   : > { %s1947_s17 = sand.u32 (!%p2328_p9), 1, %s1590_s19   ;;  %p2329_p12 = scmp.ne.s32.totalorder (!%p2328_p9), %s2314_s15, 0 }
  0x9f   : > { %268 = sbr.rel (%p2328_p9) target bundleno = 615 (0x267), region = 36  ;;  %s1070_s8 = sshll.u32 (!%p2328_p9), %s1947_s17, 6 }
  0xa0   : > { %s271_s27 = scalar_lea.sflag (!%p2328_p9), [#allocation6], %s1947_s17  ;;  %s1951_s1 = scalar_lea.vmem (!%p2328_p9), [#allocation5], %s1070_s8 }
  0xa6   : > { %1557 = dma.done.wait (%p2329_p12), %s271_s27, 1024  }
  0xa7   : > { %1559 = vsyncadd (%p2329_p12), %s271_s27, 4294966272  ;;  %s279_s7 = sand.u32 1, %s1707_s26   ;;  %s281_s30 = sand.u32 1, %s1578_s16  }
  0xa8   : > { %s1071_s13 = sshll.u32 %s281_s30, 6  ;;  %s280_s4 = scalar_lea.sflag [#allocation9], %s279_s7 }
  0xa9   : > { %s1959_s22 = scalar_lea.vmem [#allocation8], %s1071_s13  ;;  %p2330_p3 = scmp.ne.s32.totalorder %s2305_s5, 0 }
  0xab   : > { %1561 = dma.done.wait (%p2330_p3), %s280_s4, 3072  }
  0xac   : > { %1563 = vsyncadd (%p2330_p3), %s280_s4, 4294964224  ;;  %s1072_s9 = sshll.u32 %s281_s30, 7  ;;  %s298_s10 = scalar_lea.sflag [#allocation12], %s1947_s17 }
  0xad   : > { %s1965_s29 = scalar_lea.vmem [#allocation10], %s1072_s9  ;;  %s300_s14 = scalar_lea.vmem [#allocation11], %s1947_s17 }
  0xae   : > { %1565 = dma.done.wait (%p2329_p12), %s298_s10, 16  }
  0xaf   : > { %1567 = vsyncadd (%p2329_p12), %s298_s10, 4294967280  ;;  %s337_s26 = scalar_lea.vmem [#allocation13], %s1947_s17  ;;  %p1073_p0 = scmp.ne.s32.totalorder %s1598_s21, 0 }
  0xb0   : > { %v1624_v0 = vmov (!%p1073_p0), -inf   ;;  %v1625_v1 = vmov (!%p1073_p0), 0.0  }
  0xb1   : > { %345 = sbr.rel (%p1073_p0) target bundleno = 184 (0xb8), region = 56  ;;  %346 = vst [vmem:[#allocation2] sm:$0x1] (!%p1073_p0), %v1624_v0  ;;  %347 = vst [vmem:[#allocation3] sm:$0x1] (!%p1073_p0), %v1625_v1 }
  0xb2   : > { %348 = vst [vmem:[#allocation4] sm:$0x1] (!%p1073_p0), %v1625_v1 }
  0xb8 PF: > { %v1312_v2 = vld [vmem:[%s1951_s1] sm:$0xff]   ;;  %vm557_vm0 = vcmask 261120   ;;  %v1313_v3 = vld [vmem:[%s1951_s1 + $0x8] sm:$0xff]   ;;  %v1626_v5 = vmov 0   ;;  %v1314_v6 = vld [vmem:[%s1951_s1 + $0x10] sm:$0xff]   ;;  %v732_v51 = vlaneseq  ;;  %s1098_s5 = sshll.u32 %s1598_s21, 7 }
  0xb9   : > { %1170 = vmatprep.subr.msk.bf16.mxu0 %vm557_vm0, %v1312_v2  ;;  %1171 = vmatprep.subr.msk.bf16.mxu1 %vm557_vm0, %v1312_v2  ;;  %v583_v4 = vsel %vm557_vm0, %v1312_v2, 0  ;;  %v586_v7 = vsel %vm557_vm0, %v1313_v3, 0  ;;  %v1320_v8 = vld [vmem:[%s1959_s22] sm:$0xff]   ;;  %v589_v10 = vsel %vm557_vm0, %v1314_v6, 0  ;;  %v1315_v11 = vld [vmem:[%s1951_s1 + $0x18] sm:$0xff]   ;;  %v383_v12 = vld [vmem:[%s1965_s29 + $0x10] sm:$0xff]  ;;  %v811_v54 = vstv %s1098_s5 }
  0xba   : > { %1123 = vmatpush3.bf16.xpose.msra.mxu0 %v583_v4  ;;  %1162 = vmatpush3.bf16.xpose.msra.mxu1 %v583_v4  ;;  %v1321_v9 = vld [vmem:[%s1959_s22 + $0x20] sm:$0xff]   ;;  %v384_v14 = vld [vmem:[%s1965_s29 + $0x18] sm:$0xff]  ;;  %v382_v15 = vld [vmem:[%s1965_s29 + $0x8] sm:$0xff]  ;;  %v592_v18 = vsel %vm557_vm0, %v1315_v11, 0  ;;  %v2044_v52 = vshrl.u32 %v732_v51, 7  ;;  %p1099_p7 = scmp.ne.s32.totalorder %s1598_s21, 1 }
  0xbb   : > { %1172 = vmatprep.subr.msk.bf16.mxu0 %vm557_vm0, %v1313_v3  ;;  %1173 = vmatprep.subr.msk.bf16.mxu1 %vm557_vm0, %v1313_v3  ;;  %v381_v13 = vld [vmem:[%s1965_s29] sm:$0xff]  ;;  %v386_v16 = vld [vmem:[%s1965_s29 + $0x28] sm:$0xff]  ;;  %v388_v20 = vld [vmem:[%s1965_s29 + $0x38] sm:$0xff] }
  0xbc   : > { %1311 = vset.pattern.permute.xlu1 %v1626_v5  ;;  %1310 = vset.pattern.permute.xlu0 %v1626_v5  ;;  %v385_v17 = vld [vmem:[%s1965_s29 + $0x20] sm:$0xff]  ;;  %v387_v21 = vld [vmem:[%s1965_s29 + $0x30] sm:$0xff]  ;;  %v390_v22 = vld [vmem:[%s1965_s29 + $0x48] sm:$0xff]  ;;  %v734_v57 = vsub.s32 0, %v2044_v52  ;;  %v815_v62 = vadd.s32 8, %v2044_v52  ;;  %v816_v1 = vadd.s32 16, %v2044_v52 }
  0xbd   : > { %1138 = vmatprep.mubr.msk.bf16.mxu0 %vm557_vm0, %v1320_v8  ;;  %1146 = vmatprep.mubr.msk.bf16.mxu1 %vm557_vm0, %v1321_v9  ;;  %v1316_v19 = vld [vmem:[%s1951_s1 + $0x20] sm:$0xff]   ;;  %v1317_v25 = vld [vmem:[%s1951_s1 + $0x28] sm:$0xff]   ;;  %v392_v26 = vld [vmem:[%s1965_s29 + $0x58] sm:$0xff] }
  0xbe   : > { %409 = vperm.xlu1 %1311, %v383_v12   ;;  %399 = vperm.xlu0 %1310, %v381_v13   ;;  %v389_v23 = vld [vmem:[%s1965_s29 + $0x40] sm:$0xff]  ;;  %v595_v24 = vsel %vm557_vm0, %v1316_v19, 0  ;;  %v391_v27 = vld [vmem:[%s1965_s29 + $0x50] sm:$0xff]  ;;  %v394_v28 = vld [vmem:[%s1965_s29 + $0x68] sm:$0xff]  ;;  %v598_v30 = vsel %vm557_vm0, %v1317_v25, 0  ;;  %v820_v12 = vadd.s32 48, %v2044_v52 }
  0xbf   : > { %v393_v29 = vld [vmem:[%s1965_s29 + $0x60] sm:$0xff]  ;;  %v1318_v31 = vld [vmem:[%s1951_s1 + $0x30] sm:$0xff]   ;;  %v396_v32 = vld [vmem:[%s1965_s29 + $0x78] sm:$0xff]  ;;  %v818_v13 = vadd.s32 32, %v2044_v52 }
  0xc0   : > { %v395_v33 = vld [vmem:[%s1965_s29 + $0x70] sm:$0xff]  ;;  %v601_v34 = vsel %vm557_vm0, %v1318_v31, 0  ;;  %v1319_v35 = vld [vmem:[%s1951_s1 + $0x38] sm:$0xff]   ;;  %v1322_v37 = vld [vmem:[%s1959_s22 + $0x8] sm:$0xff]  }
  0xc1   : > { %v604_v36 = vsel %vm557_vm0, %v1319_v35, 0  ;;  %v1323_v38 = vld [vmem:[%s1959_s22 + $0x28] sm:$0xff]   ;;  %v1324_v39 = vld [vmem:[%s1959_s22 + $0x10] sm:$0xff]   ;;  %v1326_v41 = vld [vmem:[%s1959_s22 + $0x18] sm:$0xff]  }
  0xc2   : > { %1125 = vmatpush3.bf16.xpose.msra.mxu0 %v586_v7  ;;  %1163 = vmatpush3.bf16.xpose.msra.mxu1 %v586_v7  ;;  %v1325_v40 = vld [vmem:[%s1959_s22 + $0x30] sm:$0xff]   ;;  %v1327_v42 = vld [vmem:[%s1959_s22 + $0x38] sm:$0xff]   ;;  %v817_v7 = vadd.s32 24, %v2044_v52 }
  0xc3   : > { %1174 = vmatprep.subr.msk.bf16.mxu0 %vm557_vm0, %v1314_v6  ;;  %1175 = vmatprep.subr.msk.bf16.mxu1 %vm557_vm0, %v1314_v6  ;;  %v809_v53 = vld [vmem:[%s300_s14] sm:$0x1] }
  0xc4   : > { %414 = vperm.xlu1 %1311, %v384_v14   ;;  %404 = vperm.xlu0 %1310, %v382_v15   ;;  %v812_v58 = vsub.s32 %v809_v53, %v811_v54 }
  0xc6   : > { %v2053_v61 = vrot.slane %v812_v58, %v734_v57 }
  0xc8   : > { %424 = vperm.xlu1 %1311, %v386_v16   ;;  %419 = vperm.xlu0 %1310, %v385_v17   ;;  %vm835_vm1 = vcmp.eq.s32.totalorder %v2044_v52, %v2053_v61  ;;  %vm836_vm2 = vcmp.eq.s32.totalorder %v815_v62, %v2053_v61  ;;  %vm837_vm3 = vcmp.eq.s32.totalorder %v816_v1, %v2053_v61 }
  0xc9   : > { %vm838_vm4 = vcmp.eq.s32.totalorder %v817_v7, %v2053_v61  ;;  %vm839_vm5 = vcmp.eq.s32.totalorder %v818_v13, %v2053_v61  ;;  %vm841_vm6 = vcmp.eq.s32.totalorder %v820_v12, %v2053_v61  ;;  %v825_v12 = vadd.s32 88, %v2044_v52 }
  0xca   : > { %1127 = vmatpush3.bf16.xpose.msra.mxu0 %v589_v10  ;;  %1164 = vmatpush3.bf16.xpose.msra.mxu1 %v589_v10 }
  0xcb   : > { %1176 = vmatprep.subr.msk.bf16.mxu0 %vm557_vm0, %v1315_v11  ;;  %1177 = vmatprep.subr.msk.bf16.mxu1 %vm557_vm0, %v1315_v11  ;;  %vm846_vm12 = vcmp.eq.s32.totalorder %v825_v12, %v2053_v61 }
  0xcc   : > { %434 = vperm.xlu1 %1311, %v388_v20   ;;  %429 = vperm.xlu0 %1310, %v387_v21   ;;  %v819_v21 = vadd.s32 40, %v2044_v52 }
  0xce   : > { %vm840_vm8 = vcmp.eq.s32.totalorder %v819_v21, %v2053_v61 }
  0xd0   : > { %444 = vperm.xlu1 %1311, %v390_v22   ;;  %439 = vperm.xlu0 %1310, %v389_v23   ;;  %v822_v23 = vadd.s32 64, %v2044_v52 }
  0xd2   : > { %1129 = vmatpush3.bf16.xpose.msra.mxu0 %v592_v18  ;;  %1165 = vmatpush3.bf16.xpose.msra.mxu1 %v592_v18  ;;  %v821_v18 = vadd.s32 56, %v2044_v52  ;;  %vm843_vm9 = vcmp.eq.s32.totalorder %v822_v23, %v2053_v61 }
  0xd3   : > { %1178 = vmatprep.subr.msk.bf16.mxu0 %vm557_vm0, %v1316_v19  ;;  %1179 = vmatprep.subr.msk.bf16.mxu1 %vm557_vm0, %v1316_v19 }
  0xd4   : > { %454 = vperm.xlu1 %1311, %v392_v26   ;;  %449 = vperm.xlu0 %1310, %v391_v27   ;;  %v823_v27 = vadd.s32 72, %v2044_v52  ;;  %vm842_vm7 = vcmp.eq.s32.totalorder %v821_v18, %v2053_v61 }
  0xd6   : > { %vm844_vm10 = vcmp.eq.s32.totalorder %v823_v27, %v2053_v61 }
  0xd8   : > { %464 = vperm.xlu1 %1311, %v394_v28   ;;  %459 = vperm.xlu0 %1310, %v393_v29  }
  0xda   : > { %1131 = vmatpush3.bf16.xpose.msra.mxu0 %v595_v24  ;;  %1166 = vmatpush3.bf16.xpose.msra.mxu1 %v595_v24 }
  0xdb   : > { %1180 = vmatprep.subr.msk.bf16.mxu0 %vm557_vm0, %v1317_v25  ;;  %1181 = vmatprep.subr.msk.bf16.mxu1 %vm557_vm0, %v1317_v25 }
  0xdc   : > { %474 = vperm.xlu1 %1311, %v396_v32   ;;  %469 = vperm.xlu0 %1310, %v395_v33  }
  0xe2   : > { %1133 = vmatpush3.bf16.xpose.msra.mxu0 %v598_v30  ;;  %1167 = vmatpush3.bf16.xpose.msra.mxu1 %v598_v30 }
  0xe3   : > { %1182 = vmatprep.subr.msk.bf16.mxu0 %vm557_vm0, %v1318_v31  ;;  %1183 = vmatprep.subr.msk.bf16.mxu1 %vm557_vm0, %v1318_v31 }
  0xea   : > { %1135 = vmatpush3.bf16.xpose.msra.mxu0 %v601_v34  ;;  %1168 = vmatpush3.bf16.xpose.msra.mxu1 %v601_v34 }
  0xeb   : > { %1184 = vmatprep.subr.msk.bf16.mxu0 %vm557_vm0, %v1319_v35  ;;  %1185 = vmatprep.subr.msk.bf16.mxu1 %vm557_vm0, %v1319_v35 }
  0xf2   : > { %1137 = vmatpush3.bf16.xpose.msra.mxu0 %v604_v36  ;;  %1169 = vmatpush3.bf16.xpose.msra.mxu1 %v604_v36 }
  0xf9   : > { %1139 = vmatmul.mubr.msk.bf16.vlgmr.msra.gmra.mrb[0].mxu0 %vm557_vm0, %v1322_v37  ;;  %1147 = vmatmul.mubr.msk.bf16.vlgmr.msra.gmra.mrb[0].mxu1 %vm557_vm0, %v1323_v38 }
  0xfa   : > { %1142 = vmatprep.mubr.msk.bf16.mxu0 %vm557_vm0, %v1324_v39  ;;  %1150 = vmatprep.mubr.msk.bf16.mxu1 %vm557_vm0, %v1325_v40 }
 0x101   : > { %1143 = vmatmul.mubr.msk.bf16.gmra.mrb[4].mxu0 %vm557_vm0, %v1326_v41  ;;  %1151 = vmatmul.mubr.msk.bf16.gmra.mrb[4].mxu1 %vm557_vm0, %v1327_v42 }
 0x13d   : > { %v410_v43 = vpop.permute.xlu1 %409  ;;  %v400_v44 = vpop.permute.xlu0 %399 }
 0x143   : > { %v415_v45 = vpop.permute.xlu1 %414  ;;  %v405_v46 = vpop.permute.xlu0 %404 }
 0x147   : > { %v2039_v47 = vpop.permute.xlu1 %424  ;;  %v420_v48 = vpop.permute.xlu0 %419 }
 0x14b   : > { %v2041_v49 = vpop.permute.xlu1 %434  ;;  %v430_v50 = vpop.permute.xlu0 %429 }
 0x14f   : > { %v2048_v55 = vpop.permute.xlu1 %444  ;;  %v440_v56 = vpop.permute.xlu0 %439 }
 0x153   : > { %v455_v59 = vpop.permute.xlu1 %454  ;;  %v450_v60 = vpop.permute.xlu0 %449 }
 0x157   : > { %v460_v14 = vpop.permute.xlu0 %459  ;;  %v465_v19 = vpop.permute.xlu1 %464 }
 0x15b   : > { %v470_v40 = vpop.permute.xlu0 %469  ;;  %v475_v58 = vpop.permute.xlu1 %474 }
 0x1cc   : > { %v1140_v63 = vpop.f32.mrb[0].mxu0  ;;  %v1148_v0 = vpop.f32.mrb[0].mxu1 }
 0x1cd   : > { %v640_v2 = vpop.f32.mrb[1].mxu0  ;;  %v672_v3 = vpop.f32.mrb[1].mxu1  ;;  %v2063_v10 = vadd.f32 %v1140_v63, %v410_v43  ;;  %v2088_v35 = vadd.f32 %v1148_v0, %v450_v60 }
 0x1ce   : > { %v2057_v4 = vadd.f32 %v640_v2, %v400_v44  ;;  %v1141_v5 = vpop.f32.mrb[2].mxu0  ;;  %v1149_v6 = vpop.f32.mrb[2].mxu1  ;;  %v2093_v41 = vadd.f32 %v672_v3, %v440_v56 }
 0x1cf   : > { %v643_v8 = vpop.f32.mrb[3].mxu0  ;;  %v675_v9 = vpop.f32.mrb[3].mxu1  ;;  %v2071_v16 = vadd.f32 %v1141_v5, %v415_v45  ;;  %v853_v22 = vsel %vm837_vm3, %v2063_v10, 0.0  ;;  %v2109_v51 = vadd.f32 %v1149_v6, %v455_v59  ;;  %v824_v5 = vadd.s32 80, %v2044_v52 }
 0x1d0   : > { %v2065_v11 = vadd.f32 %v643_v8, %v405_v46  ;;  %v851_v15 = vsel %vm835_vm1, %v2057_v4, 0.0 }
 0x1d1   : > { %v854_v31 = vsel %vm838_vm4, %v2071_v16, 0.0  ;;  %vm845_vm11 = vcmp.eq.s32.totalorder %v824_v5, %v2053_v61 }
 0x1d2   : > { %v852_v17 = vsel %vm836_vm2, %v2065_v11, 0.0 }
 0x1d3   : > { %v867_v20 = vadd.f32 %v852_v17, %v851_v15  ;;  %v859_v15 = vsel %vm843_vm9, %v2093_v41, 0.0 }
 0x1d4   : > { %v1144_v24 = vpop.f32.mrb[4].mxu0  ;;  %v1152_v25 = vpop.f32.mrb[4].mxu1 }
 0x1d5   : > { %v868_v26 = vadd.f32 %v867_v20, %v853_v22  ;;  %v2080_v28 = vadd.f32 %v1144_v24, %v430_v50  ;;  %v656_v29 = vpop.f32.mrb[5].mxu0  ;;  %v688_v30 = vpop.f32.mrb[5].mxu1  ;;  %v2103_v45 = vadd.f32 %v1152_v25, %v470_v40  ;;  %v827_v22 = vadd.s32 104, %v2044_v52 }
 0x1d6   : > { %v2085_v32 = vadd.f32 %v656_v29, %v420_v48  ;;  %v1145_v33 = vpop.f32.mrb[6].mxu0  ;;  %v1153_v34 = vpop.f32.mrb[6].mxu1  ;;  %v2111_v53 = vadd.f32 %v688_v30, %v460_v14  ;;  %v861_v24 = vsel %vm845_vm11, %v2088_v35, 0.0  ;;  %v862_v29 = vsel %vm846_vm12, %v2109_v51, 0.0 }
 0x1d7   : > { %v706_v36 = vmax.f32 %v2063_v10, %v2080_v28  ;;  %v869_v37 = vadd.f32 %v868_v26, %v854_v31  ;;  %v659_v38 = vpop.f32.mrb[7].mxu0  ;;  %v691_v39 = vpop.f32.mrb[7].mxu1  ;;  %v2101_v44 = vadd.f32 %v1145_v33, %v2041_v49  ;;  %v2117_v49 = vadd.f32 %v675_v9, %v2048_v55 }
 0x1d8   : > { %v704_v42 = vmax.f32 %v2057_v4, %v2085_v32  ;;  %v855_v43 = vsel %vm839_vm5, %v2085_v32, 0.0  ;;  %v2107_v50 = vadd.f32 %v659_v38, %v2039_v47  ;;  %v2126_v63 = vadd.f32 %v1153_v34, %v475_v58 }
 0x1d9   : > { %v710_v46 = vmax.f32 %v706_v36, %v2088_v35  ;;  %v870_v48 = vadd.f32 %v869_v37, %v855_v43  ;;  %v707_v56 = vmax.f32 %v2071_v16, %v2101_v44  ;;  %v857_v55 = vsel %vm841_vm6, %v2080_v28, 0.0 }
 0x1da   : > { %v708_v54 = vmax.f32 %v704_v42, %v2093_v41  ;;  %v705_v62 = vmax.f32 %v2065_v11, %v2107_v50  ;;  %v856_v47 = vsel %vm840_vm8, %v2107_v50, 0.0  ;;  %v2132_v2 = vadd.f32 %v691_v39, %v465_v19 }
 0x1db   : > { %v714_v60 = vmax.f32 %v710_v46, %v2103_v45  ;;  %v711_v0 = vmax.f32 %v707_v56, %v2109_v51  ;;  %v871_v1 = vadd.f32 %v870_v48, %v856_v47  ;;  %v858_v8 = vsel %vm842_vm7, %v2101_v44, 0.0  ;;  %v2161_v46 = vld [vmem:[#allocation2] sm:$0x1] }
 0x1dc   : > { %v712_v59 = vmax.f32 %v708_v54, %v2111_v53  ;;  %v709_v3 = vmax.f32 %v705_v62, %v2117_v49  ;;  %v826_v19 = vadd.s32 96, %v2044_v52  ;;  %v860_v21 = vsel %vm844_vm10, %v2117_v49, 0.0 }
 0x1dd   : > { %v715_v6 = vmax.f32 %v711_v0, %v2126_v63  ;;  %v872_v7 = vadd.f32 %v871_v1, %v857_v55  ;;  %v828_v26 = vadd.s32 112, %v2044_v52  ;;  %v829_v31 = vadd.s32 120, %v2044_v52 }
 0x1de   : > { %v713_v9 = vmax.f32 %v709_v3, %v2132_v2  ;;  %vm847_vm13 = vcmp.eq.s32.totalorder %v826_v19, %v2053_v61  ;;  %vm848_vm14 = vcmp.eq.s32.totalorder %v827_v22, %v2053_v61 }
 0x1df   : > { %v717_v13 = vmax.f32 %v714_v60, %v715_v6  ;;  %v873_v14 = vadd.f32 %v872_v7, %v858_v8  ;;  %v863_v34 = vsel %vm847_vm13, %v2111_v53, 0.0  ;;  %vm849_vm15 = vcmp.eq.s32.totalorder %v828_v26, %v2053_v61 }
 0x1e0   : > { %v716_v17 = vmax.f32 %v712_v59, %v713_v9  ;;  %v864_v39 = vsel %vm848_vm14, %v2132_v2, 0.0  ;;  %vm850_vm0 = vcmp.eq.s32.totalorder %v829_v31, %v2053_v61  ;;  %v865_v42 = vsel %vm849_vm15, %v2103_v45, 0.0 }
 0x1e1   : > { %v874_v20 = vadd.f32 %v873_v14, %v859_v15  ;;  %v866_v54 = vsel %vm850_vm0, %v2126_v63, 0.0 }
 0x1e2   : > { %v718_v18 = vmax.f32 %v716_v17, %v717_v13 }
 0x1e3   : > { %v875_v23 = vadd.f32 %v874_v20, %v860_v21 }
 0x1e4   : > { %v719_v25 = vrot.slane %v718_v18, 4 }
 0x1e5   : > { %v876_v27 = vadd.f32 %v875_v23, %v861_v24 }
 0x1e6   : > { %v720_v30 = vmax.f32 %v718_v18, %v719_v25 }
 0x1e7   : > { %v877_v33 = vadd.f32 %v876_v27, %v862_v29 }
 0x1e8   : > { %v721_v36 = vrot.slane %v720_v30, 2 }
 0x1e9   : > { %v878_v37 = vadd.f32 %v877_v33, %v863_v34 }
 0x1ea   : > { %v722_v38 = vmax.f32 %v720_v30, %v721_v36 }
 0x1eb   : > { %v879_v40 = vadd.f32 %v878_v37, %v864_v39 }
 0x1ec   : > { %v723_v43 = vrot.slane %v722_v38, 1 }
 0x1ed   : > { %v880_v48 = vadd.f32 %v879_v40, %v865_v42 }
 0x1ee   : > { %v724_v56 = vmax.f32 %v722_v38, %v723_v43 }
 0x1ef   : > { %v881_v58 = vadd.f32 %v880_v48, %v866_v54 }
 0x1f0   : > { %v2165_v60 = vmax.f32 %v2161_v46, %v724_v56 }
 0x1f1   : > { %v882_v0 = vrot.slane %v881_v58, 4 }
 0x1f2   : > { %v2170_v62 = vrot.slane %v2165_v60, %v734_v57  ;;  %808 = vst [vmem:[#allocation2] sm:$0x1] %v2165_v60 }
 0x1f3   : > { %v883_v6 = vadd.f32 %v882_v0, %v881_v58 }
 0x1f4   : > { %v737_v61 = vsub.f32 %v2057_v4, %v2170_v62  ;;  %v738_v47 = vsub.f32 %v2065_v11, %v2170_v62  ;;  %v739_v59 = vsub.f32 %v2063_v10, %v2170_v62  ;;  %v740_v1 = vsub.f32 %v2071_v16, %v2170_v62 }
 0x1f5   : > { %v741_v52 = vsub.f32 %v2085_v32, %v2170_v62  ;;  %v742_v57 = vsub.f32 %v2107_v50, %v2170_v62  ;;  %v743_v55 = vsub.f32 %v2080_v28, %v2170_v62  ;;  %v744_v4 = vsub.f32 %v2101_v44, %v2170_v62 }
 0x1f6   : > { %v745_v11 = vsub.f32 %v2093_v41, %v2170_v62  ;;  %v746_v10 = vsub.f32 %v2117_v49, %v2170_v62  ;;  %v747_v16 = vsub.f32 %v2088_v35, %v2170_v62  ;;  %v748_v32 = vsub.f32 %v2109_v51, %v2170_v62 }
 0x1f7   : > { %v749_v50 = vsub.f32 %v2111_v53, %v2170_v62  ;;  %v750_v28 = vsub.f32 %v2132_v2, %v2170_v62  ;;  %v751_v44 = vsub.f32 %v2103_v45, %v2170_v62  ;;  %v752_v41 = vsub.f32 %v2126_v63, %v2170_v62  ;;  %v830_v45 = vld [vmem:[#allocation4] sm:$0x1] }
 0x1f8   : > { %v753_v3 = vmul.f32 1.442695, %v737_v61  ;;  %v755_v49 = vmul.f32 1.442695, %v738_v47  ;;  %v757_v5 = vmul.f32 1.442695, %v739_v59  ;;  %v726_v61 = vsub.f32 %v2161_v46, %v2165_v60 }
 0x1f9   : > { %v759_v35 = vmul.f32 1.442695, %v740_v1  ;;  %v761_v51 = vmul.f32 1.442695, %v741_v52  ;;  %v884_v7 = vrot.slane %v883_v6, 2 }
 0x1fa   : > { %1328 = vpow2.f32 %v753_v3  ;;  %v763_v53 = vmul.f32 1.442695, %v742_v57  ;;  %v765_v2 = vmul.f32 1.442695, %v743_v55  ;;  %v767_v12 = vmul.f32 1.442695, %v744_v4 }
 0x1fb   : > { %1330 = vpow2.f32 %v755_v49  ;;  %v885_v8 = vadd.f32 %v884_v7, %v883_v6  ;;  %v769_v15 = vmul.f32 1.442695, %v745_v11  ;;  %v771_v21 = vmul.f32 1.442695, %v746_v10 }
 0x1fc   : > { %1332 = vpow2.f32 %v757_v5  ;;  %v773_v23 = vmul.f32 1.442695, %v747_v16  ;;  %v775_v26 = vmul.f32 1.442695, %v748_v32  ;;  %v777_v30 = vmul.f32 1.442695, %v749_v50 }
 0x1fd   : > { %1334 = vpow2.f32 %v759_v35  ;;  %v886_v9 = vrot.slane %v885_v8, 1  ;;  %v779_v34 = vmul.f32 1.442695, %v750_v28  ;;  %v781_v38 = vmul.f32 1.442695, %v751_v44 }
 0x1fe   : > { %1336 = vpow2.f32 %v761_v51  ;;  %v783_v42 = vmul.f32 1.442695, %v752_v41  ;;  %v727_v52 = vmul.f32 1.442695, %v726_v61  ;;  %v729_v41 = vld [vmem:[#allocation3] sm:$0x1] }
 0x1ff   : > { %1338 = vpow2.f32 %v763_v53  ;;  %v887_v63 = vadd.f32 %v886_v9, %v885_v8  ;;  %v895_v35 = vld [vmem:[#allocation2] sm:$0x1] (!%p1099_p7) }
 0x200   : > { %1340 = vpow2.f32 %v765_v2 }
 0x201   : > { %v888_v17 = vadd.f32 %v887_v63, %v830_v45  ;;  %1342 = vpow2.f32 %v767_v12 }
 0x202   : > { %1344 = vpow2.f32 %v769_v15 }
 0x203   : > { %889 = vst [vmem:[#allocation4] sm:$0x1] %v888_v17  ;;  %1346 = vpow2.f32 %v771_v21 }
 0x204   : > { %v1329_v13 = vpop.eup %1328  ;;  %1348 = vpow2.f32 %v773_v23 }
 0x205   : > { %v1331_v14 = vpop.eup %1330  ;;  %1350 = vpow2.f32 %v775_v26 }
 0x206   : > { %v785_v19 = vadd.f32 %v1331_v14, %v1329_v13  ;;  %v1333_v20 = vpop.eup %1332  ;;  %1352 = vpow2.f32 %v777_v30 }
 0x207   : > { %v1335_v22 = vpop.eup %1334  ;;  %1354 = vpow2.f32 %v779_v34 }
 0x208   : > { %v786_v18 = vadd.f32 %v1333_v20, %v785_v19  ;;  %v1337_v25 = vpop.eup %1336  ;;  %1356 = vpow2.f32 %v781_v38 }
 0x209   : > { %v1339_v29 = vpop.eup %1338  ;;  %1358 = vpow2.f32 %v783_v42 }
 0x20a   : > { %v787_v24 = vadd.f32 %v1335_v22, %v786_v18  ;;  %v1341_v33 = vpop.eup %1340  ;;  %1360 = vpow2.f32 %v727_v52  ;;  %v894_v7 = vld [vmem:[#allocation4] sm:$0x1] (!%p1099_p7) }
 0x20b   : > { %v1343_v37 = vpop.eup %1342 }
 0x20c   : > { %v788_v27 = vadd.f32 %v1337_v25, %v787_v24  ;;  %v1345_v40 = vpop.eup %1344 }
 0x20d   : > { %v1347_v48 = vpop.eup %1346 }
 0x20e   : > { %v789_v31 = vadd.f32 %v1339_v29, %v788_v27  ;;  %v1349_v56 = vpop.eup %1348 }
 0x20f   : > { %v1351_v62 = vpop.eup %1350 }
 0x210   : > { %v790_v36 = vadd.f32 %v1341_v33, %v789_v31  ;;  %v1353_v59 = vpop.eup %1352 }
 0x211   : > { %v1355_v1 = vpop.eup %1354 }
 0x212   : > { %v791_v39 = vadd.f32 %v1343_v37, %v790_v36  ;;  %v1357_v55 = vpop.eup %1356 }
 0x213   : > { %v1359_v11 = vpop.eup %1358 }
 0x214   : > { %v792_v43 = vadd.f32 %v1345_v40, %v791_v39  ;;  %v1361_v44 = vpop.eup %1360 }
 0x215   : > { %v730_v49 = vmul.f32 %v1361_v44, %v729_v41 }
 0x216   : > { %v793_v54 = vadd.f32 %v1347_v48, %v792_v43 }
 0x218   : > { %v794_v58 = vadd.f32 %v1349_v56, %v793_v54 }
 0x21a   : > { %v795_v47 = vadd.f32 %v1351_v62, %v794_v58 }
 0x21c   : > { %v796_v0 = vadd.f32 %v1353_v59, %v795_v47 }
 0x21e   : > { %v797_v57 = vadd.f32 %v1355_v1, %v796_v0 }
 0x220   : > { %v798_v4 = vadd.f32 %v1357_v55, %v797_v57 }
 0x222   : > { %v799_v10 = vadd.f32 %v1359_v11, %v798_v4 }
 0x224   : > { %v800_v16 = vrot.slane %v799_v10, 4 }
 0x226   : > { %v801_v32 = vadd.f32 %v800_v16, %v799_v10 }
 0x228   : > { %v802_v50 = vrot.slane %v801_v32, 2 }
 0x22a   : > { %v803_v28 = vadd.f32 %v802_v50, %v801_v32 }
 0x22c   : > { %v804_v3 = vrot.slane %v803_v28, 1  ;;  %893 = sbr.rel (%p1099_p7) target bundleno = 588 (0x24c), region = 60 }
 0x22e   : > { %v805_v46 = vadd.f32 %v804_v3, %v803_v28 }
 0x230   : > { %v806_v60 = vadd.f32 %v805_v46, %v730_v49 }
 0x232   : > { %807 = vst [vmem:[#allocation3] sm:$0x1] %v806_v60 }
 0x239   : > { %v896_v5 = vld [vmem:[#allocation3] sm:$0x1] }
 0x23a   : > { %1362 = vlog2.f32 %v896_v5 }
 0x244   : > { %v1363_v6 = vpop.eup %1362 }
 0x245   : > { %v898_v51 = vmul.f32 0.6931472, %v1363_v6 }
 0x247   : > { %v899_v53 = vadd.f32 %v898_v51, %v895_v35 }
 0x249   : > { %v900_v8 = vsub.f32 %v894_v7, %v899_v53 }
 0x24b   : > { %901 = vst [vmem:[%s337_s26] sm:$0x1] %v900_v8 }
 0x24c PF: > { %s2331_s15 = sld [smem:[#allocation21_spill]]  ;;  %s2332_s12 = sld [smem:[#allocation29_spill]] }
 0x24d   : > { %s915_s23 = sshll.u32 %s337_s26, 4  ;;  %s903_s6 = scalar_lea.sflag [#allocation7], %s1947_s17  ;;  %s916_s23 = int_to_ptr.vmem [resolvable:$true] %s915_s23 }
 0x24e   : > { %s1484_s8 = scalar_lea.vmem %s916_s23, 16  ;;  %p2333_p5 = scmp.ne.s32.totalorder %s2316_s28, 0 }
 0x24f   : > { %p1485_p8 = scmp.ne.s32.totalorder %s916_s23, %s1484_s8  ;;  %s1627_s27 = smov [#allocation13]  }
 0x250   : > { %s1488_s1 = sshll.u32 %s1627_s27, 4  ;;  %s1489_s1 = int_to_ptr.vmem [resolvable:$false] %s1488_s1 }
 0x251   : > { %p1486_p10 = pnand %p1485_p8, %p2333_p5  ;;  %s1490_s7 = scalar_lea.vmem %s1489_s1, 32 }
 0x252   : > { %s1100_s18 = sshll.u32 %s2331_s15, 4  ;;  %p1491_p11 = scmp.lt.s32.totalorder %s916_s23, %s1489_s1 }
 0x253   : > { %s2214_s20 = scalar_lea.hbm %s2332_s12, %s1100_s18  ;;  %p1487_p6 = pneg %p1486_p10 }
 0x254   : > { %p1492_p13 = scmp.lt.s32.totalorder %s1490_s7, %s1484_s8 }
 0x256   : > { %p1493_p4 = por %p1492_p13, %p1491_p11 }
 0x258   : > { %p1494_p1 = pnand %p1493_p4, %p1487_p6 }
 0x25a   : > { %1497 = shalt.err (!%p1494_p1)
}
 0x25b   : > { %s1498_s17 = scalar_lea.hbm %s2214_s20, 16  ;;  %s1502_s4 = scalar_lea.hbm %s2332_s12, 32 }
 0x25c   : > { %p1499_p2 = scmp.ne.s32.totalorder %s2214_s20, %s1498_s17  ;;  %p1503_p3 = scmp.lt.u32.totalorder %s2214_s20, %s2332_s12 }
 0x25d   : > { %p1504_p0 = scmp.lt.u32.totalorder %s1502_s4, %s1498_s17  ;;  %p1506_p8 = scmp.lt.u32.totalorder %s1498_s17, %s2214_s20 }
 0x25e   : > { %p1500_p9 = pnand %p1499_p2, %p2333_p5 }
 0x25f   : > { %p1505_p7 = por %p1504_p0, %p1503_p3 }
 0x260   : > { %p1501_p12 = pneg %p1500_p9 }
 0x261   : > { %p1507_p10 = por %p1506_p8, %p1505_p7 }
 0x263   : > { %p1508_p6 = pnand %p1507_p10, %p1501_p12 }
 0x265   : > { %1511 = shalt.err (!%p1508_p6)
}
 0x266   : > { %1194 = dma.vmem_to_hbm [thread:$0]  (%p2333_p5), %s916_s23, 16, %s2214_s20, %s903_s6  }
 0x267 PF: > { %s2334_s29 = sld [smem:[#allocation19_spill]]  ;;  %s2335_s10 = sld [smem:[#allocation26_spill]] }
 0x268   : > { %p1214_p11 = scmp.ge.s32.totalorder %s1614_s25, 2 }
 0x26d   : > { %s927_s14 = sand.u32 1, %s2334_s29   ;;  %p2336_p13 = scmp.ne.s32.totalorder %s2335_s10, 0 }
 0x26e   : > { %s928_s26 = scalar_lea.sflag [#allocation7], %s927_s14 }
 0x26f   : > { %p1210_p4 = pnand %p1214_p11, %p2336_p13 }
 0x271   : > { %1569 = dma.done.wait (!%p1210_p4), %s928_s26, 16  }
 0x272   : > { %1571 = vsyncadd (!%p1210_p4), %s928_s26, 4294967280  ;;  %s26_s25 = sadd.s32 1, %s1614_s25   ;;  %s2337_s5 = sld [smem:[#allocation18_spill]] }
 0x273   : > { %p23_p1 = scmp.ge.s32.totalorder %s26_s25, 6   ;;  %s2338_s17 = sld [smem:[#allocation24_spill]] }
 0x274   : > { %s2339_s28 = sld [smem:[#allocation20_spill]]  ;;  %s2340_s20 = sld [smem:[#allocation27_spill]] }
 0x275   : > { %s2341_s21 = sld [smem:[#allocation22_spill]]  ;;  %s2342_s23 = sld [smem:[#allocation23_spill]] }
 0x276   : > { %s2343_s11 = sld [smem:[#allocation25_spill]]  ;;  %s2344_s15 = smov %s1578_s16 }
 0x277   : > { %s2346_s18 = smov %s1590_s19  ;;  %s2348_s22 = smov %s1610_s24 }
 0x278   : > { %s2345_s16 = smov %s2337_s5  ;;  %25 = sbr.rel (!%p23_p1) target bundleno = 16 (0x10), region = 126 }
 0x27a   : > { %s2347_s19 = smov %s2339_s28 }
 0x27c   : > { %s2349_s24 = smov %s2343_s11 }
 0x27f   :  { %932 = vsyncpa [#allocation6], 1 }
 0x280   :  { %934 = vsyncpa [#allocation6 + $0x1], 1 }
 0x281   :  { %935 = vsyncpa [#allocation9], 1 }
 0x282   :  { %937 = vsyncpa [#allocation9 + $0x1], 1 }
 0x283   :  { %938 = vsyncpa [#allocation12], 1 }
 0x284   :  { %940 = vsyncpa [#allocation12 + $0x1], 1 }
 0x285   :  { %941 = vsyncpa [#allocation7], 1 }
 0x286   :  { %943 = vsyncpa [#allocation7 + $0x1], 1 }

</bundles_post_ra>
